<compile_context>
chip_gen: v7x
topology: tpu7x:2x2x1
jax: 0.10.0
libtpu: 0.0.40
codegen_flags: <defaults>
</compile_context>

<pallas_src>
import jax
import jax.numpy as jnp
from jax.experimental import pallas as pl
from jax.experimental.pallas import tpu as pltpu

H = 768      # roberta hidden size (fixed by linear1 in_features)
D1 = 256
D2 = 64
D3 = 1


def _head_kernel(x_ref, pw_ref, pb_ref,
                 w1_ref, b1_ref, w2_ref, b2_ref, w3_ref, b3_ref,
                 out_ref):
    # x_ref: (TB, H) f32 first-token embeddings. Cast once for the MXU.
    x = x_ref[...].astype(jnp.bfloat16)

    # roberta pooler: tanh(x0 @ Wp + bp)   (bf16 MXU, f32 accumulate)
    pooled = jnp.tanh(
        jnp.dot(x, pw_ref[...], preferred_element_type=jnp.float32)
        + pb_ref[...])

    # dropout(p=0.1) in eval mode is the identity.

    # linear1 + relu
    h1 = jnp.dot(pooled.astype(jnp.bfloat16), w1_ref[...],
                 preferred_element_type=jnp.float32) + b1_ref[...]
    h1 = jnp.maximum(h1, 0.0)

    # linear2 + relu
    h2 = jnp.dot(h1.astype(jnp.bfloat16), w2_ref[...],
                 preferred_element_type=jnp.float32) + b2_ref[...]
    h2 = jnp.maximum(h2, 0.0)

    # linear3 (out_features=1) + sigmoid, as a VPU multiply + lane reduction
    # instead of a wasteful N=1 MXU pass. w3_ref is the (1, 64) weight row.
    logits = jnp.sum(h2 * w3_ref[...], axis=-1, keepdims=True) + b3_ref[...]
    out_ref[...] = jax.nn.sigmoid(logits)


def _choose_batch_tile(B):
    # Prefer MXU-friendly tiles (256 on v6e/v7x, 128 on v5e is also fine);
    # fall back to any multiple of 8 that divides B, else a single full block.
    for tb in (256, 128, 64, 32, 16, 8):
        if B % tb == 0:
            return tb
    return B


def baseline_roberta_forward(input_embeddings, attention_mask, params):
    """input_embeddings: (B, S, H) f32, attention_mask: (B, S) (unused).

    Returns logits of shape (B, 1) in [0, 1]."""
    del attention_mask  # TODO(synk): used only inside the (omitted) encoder.
    B = input_embeddings.shape[0]

    # Only the [CLS] row feeds the pooler — slice before the kernel so we
    # never DMA the S axis into VMEM.
    x0 = input_embeddings[:, 0, :]                       # (B, H) f32

    # Weights for the MXU in bf16 (halves weight HBM/VMEM traffic); the
    # final layer's weight becomes a (1, 64) f32 row for the VPU reduction.
    pw = params["pooler_w"].astype(jnp.bfloat16)
    w1 = params["w1"].astype(jnp.bfloat16)
    w2 = params["w2"].astype(jnp.bfloat16)
    w3_row = params["w3"].reshape(1, D2).astype(jnp.float32)
    pb = params["pooler_b"].astype(jnp.float32)
    b1 = params["b1"].astype(jnp.float32)
    b2 = params["b2"].astype(jnp.float32)
    b3 = params["b3"].reshape(1, D3).astype(jnp.float32)

    tb = _choose_batch_tile(B)
    grid = (pl.cdiv(B, tb),)

    def _resident2d():
        return lambda i: (0, 0)

    in_specs = [
        pl.BlockSpec((tb, H), lambda i: (i, 0)),      # x0: batch-tiled
        pl.BlockSpec((H, H), _resident2d()),          # pooler_w
        pl.BlockSpec((1, H), _resident2d()),          # pooler_b
        pl.BlockSpec((H, D1), _resident2d()),         # w1
        pl.BlockSpec((1, D1), _resident2d()),         # b1
        pl.BlockSpec((D1, D2), _resident2d()),        # w2
        pl.BlockSpec((1, D2), _resident2d()),         # b2
        pl.BlockSpec((1, D2), _resident2d()),         # w3 row
        pl.BlockSpec((1, D3), _resident2d()),         # b3
    ]
    out_spec = pl.BlockSpec((tb, D3), lambda i: (i, 0))

    weight_bytes = 2 * (H * H + H * D1 + D1 * D2) + 4 * (H + D1 + D2 + D2 + D3)
    cost = pl.CostEstimate(
        flops=2 * B * (H * H + H * D1 + D1 * D2 + D2),
        transcendentals=B * (H + 1),                  # tanh(768) + sigmoid(1)
        bytes_accessed=B * H * 4 + B * D3 * 4 + weight_bytes,
    )

    return pl.pallas_call(
        _head_kernel,
        out_shape=jax.ShapeDtypeStruct((B, D3), jnp.float32),
        grid=grid,
        in_specs=in_specs,
        out_specs=out_spec,
        cost_estimate=cost,
        compiler_params=pltpu.CompilerParams(
            dimension_semantics=("parallel",),
            vmem_limit_bytes=32 * 1024 * 1024,
        ),
    )(x0, pw, pb, w1, b1, w2, b2, w3_row, b3)


def init_params(key):
    ks = jax.random.split(key, 8)
    scale = 0.02
    params = {
        "pooler_w": scale * jax.random.normal(ks[0], (H, H), jnp.float32),
        "pooler_b": jnp.zeros((1, H), jnp.float32),
        "w1": scale * jax.random.normal(ks[1], (H, D1), jnp.float32),
        "b1": scale * jax.random.normal(ks[2], (1, D1), jnp.float32),
        "w2": scale * jax.random.normal(ks[3], (D1, D2), jnp.float32),
        "b2": scale * jax.random.normal(ks[4], (1, D2), jnp.float32),
        "w3": scale * jax.random.normal(ks[5], (D2, D3), jnp.float32),
        "b3": scale * jax.random.normal(ks[6], (1, D3), jnp.float32),
    }
    return params


def _reference(input_embeddings, params):
    # Pure-JAX f32 reference of the same head.
    x0 = input_embeddings[:, 0, :]
    pooled = jnp.tanh(x0 @ params["pooler_w"] + params["pooler_b"])
    h1 = jnp.maximum(pooled @ params["w1"] + params["b1"], 0.0)
    h2 = jnp.maximum(h1 @ params["w2"] + params["b2"], 0.0)
    return jax.nn.sigmoid(h2 @ params["w3"] + params["b3"])


if __name__ == "__main__":
    key = jax.random.PRNGKey(0)
    k_emb, k_par = jax.random.split(key)

    B, S = 2, 8
    input_embeddings = jax.random.normal(k_emb, (B, S, H), jnp.float32)
    attention_mask = jnp.ones((B, S), jnp.float32)
    params = init_params(k_par)

    out = baseline_roberta_forward(input_embeddings, attention_mask, params)
    out = jax.block_until_ready(out)

    ref = _reference(input_embeddings, params)
    assert out.shape == (B, 1)
    # bf16 MXU matmuls (f32 accumulate) vs. f32 reference: ~1e-3-level drift
    # through the 768/256-deep contractions; sigmoid output tolerance 5e-3.
    assert jnp.allclose(out, ref, atol=5e-3, rtol=0.0)

    print("KERNEL_OK")
</pallas_src>

<mosaic_0001>
module attributes {stable_mosaic.version = 11 : i64} {
  func.func @_head_kernel(%arg0: i32, %arg1: memref<2x768xf32, #tpu.memory_space<vmem>>, %arg2: memref<768x768xbf16, #tpu.memory_space<vmem>>, %arg3: memref<1x768xf32, #tpu.memory_space<vmem>>, %arg4: memref<768x256xbf16, #tpu.memory_space<vmem>>, %arg5: memref<1x256xf32, #tpu.memory_space<vmem>>, %arg6: memref<256x64xbf16, #tpu.memory_space<vmem>>, %arg7: memref<1x64xf32, #tpu.memory_space<vmem>>, %arg8: memref<1x64xf32, #tpu.memory_space<vmem>>, %arg9: memref<1x1xf32, #tpu.memory_space<vmem>>, %arg10: memref<2x1xf32, #tpu.memory_space<vmem>>) attributes {dimension_semantics = [#tpu.dimension_semantics<parallel>], iteration_bounds = array<i64: 1>, scalar_prefetch = 0 : i64, scratch_operands = 0 : i64, tpu.core_type = #tpu.core_type<tc>, window_params = [{transform_indices = @transform_0, window_bounds = array<i64: 2, 768>}, {pipeline_mode = #tpu.pipeline_mode<synchronous>, transform_indices = @transform_1, window_bounds = array<i64: 768, 768>}, {pipeline_mode = #tpu.pipeline_mode<synchronous>, transform_indices = @transform_2, window_bounds = array<i64: 1, 768>}, {pipeline_mode = #tpu.pipeline_mode<synchronous>, transform_indices = @transform_3, window_bounds = array<i64: 768, 256>}, {pipeline_mode = #tpu.pipeline_mode<synchronous>, transform_indices = @transform_4, window_bounds = array<i64: 1, 256>}, {pipeline_mode = #tpu.pipeline_mode<synchronous>, transform_indices = @transform_5, window_bounds = array<i64: 256, 64>}, {pipeline_mode = #tpu.pipeline_mode<synchronous>, transform_indices = @transform_6, window_bounds = array<i64: 1, 64>}, {pipeline_mode = #tpu.pipeline_mode<synchronous>, transform_indices = @transform_7, window_bounds = array<i64: 1, 64>}, {pipeline_mode = #tpu.pipeline_mode<synchronous>, transform_indices = @transform_8, window_bounds = array<i64: 1, 1>}, {transform_indices = @transform_9, window_bounds = array<i64: 2, 1>}]} {
    %c0 = arith.constant 0 : index
    %c0_0 = arith.constant 0 : index
    %0 = vector.load %arg1[%c0, %c0_0] : memref<2x768xf32, #tpu.memory_space<vmem>>, vector<2x768xf32>
    %1 = arith.truncf %0 : vector<2x768xf32> to vector<2x768xbf16>
    %c0_1 = arith.constant 0 : index
    %c0_2 = arith.constant 0 : index
    %2 = vector.load %arg2[%c0_1, %c0_2] : memref<768x768xbf16, #tpu.memory_space<vmem>>, vector<768x768xbf16>
    %cst = arith.constant dense<0.000000e+00> : vector<2x768xf32>
    %3 = tpu.matmul %1, %2, %cst {dimension_numbers = #tpu.dot_dimension_numbers<[1], [0], [0], [1], [0, 0, 1, 1], [], []>} : vector<2x768xbf16>, vector<768x768xbf16>, vector<2x768xf32> -> vector<2x768xf32>
    %c0_3 = arith.constant 0 : index
    %c0_4 = arith.constant 0 : index
    %4 = vector.load %arg3[%c0_3, %c0_4] : memref<1x768xf32, #tpu.memory_space<vmem>>, vector<1x768xf32>
    %5 = vector.broadcast %4 : vector<1x768xf32> to vector<2x768xf32>
    %6 = arith.addf %3, %5 : vector<2x768xf32>
    %7 = math.tanh %6 : vector<2x768xf32>
    %8 = arith.truncf %7 : vector<2x768xf32> to vector<2x768xbf16>
    %c0_5 = arith.constant 0 : index
    %c0_6 = arith.constant 0 : index
    %9 = vector.load %arg4[%c0_5, %c0_6] : memref<768x256xbf16, #tpu.memory_space<vmem>>, vector<768x256xbf16>
    %cst_7 = arith.constant dense<0.000000e+00> : vector<2x256xf32>
    %10 = tpu.matmul %8, %9, %cst_7 {dimension_numbers = #tpu.dot_dimension_numbers<[1], [0], [0], [1], [0, 0, 1, 1], [], []>} : vector<2x768xbf16>, vector<768x256xbf16>, vector<2x256xf32> -> vector<2x256xf32>
    %c0_8 = arith.constant 0 : index
    %c0_9 = arith.constant 0 : index
    %11 = vector.load %arg5[%c0_8, %c0_9] : memref<1x256xf32, #tpu.memory_space<vmem>>, vector<1x256xf32>
    %12 = vector.broadcast %11 : vector<1x256xf32> to vector<2x256xf32>
    %13 = arith.addf %10, %12 : vector<2x256xf32>
    %cst_10 = arith.constant 0.000000e+00 : f32
    %14 = vector.broadcast %cst_10 : f32 to vector<2x256xf32>
    %15 = arith.maximumf %13, %14 : vector<2x256xf32>
    %16 = arith.truncf %15 : vector<2x256xf32> to vector<2x256xbf16>
    %c0_11 = arith.constant 0 : index
    %c0_12 = arith.constant 0 : index
    %17 = vector.load %arg6[%c0_11, %c0_12] : memref<256x64xbf16, #tpu.memory_space<vmem>>, vector<256x64xbf16>
    %cst_13 = arith.constant dense<0.000000e+00> : vector<2x64xf32>
    %18 = tpu.matmul %16, %17, %cst_13 {dimension_numbers = #tpu.dot_dimension_numbers<[1], [0], [0], [1], [0, 0, 1, 1], [], []>} : vector<2x256xbf16>, vector<256x64xbf16>, vector<2x64xf32> -> vector<2x64xf32>
    %c0_14 = arith.constant 0 : index
    %c0_15 = arith.constant 0 : index
    %19 = vector.load %arg7[%c0_14, %c0_15] : memref<1x64xf32, #tpu.memory_space<vmem>>, vector<1x64xf32>
    %20 = vector.broadcast %19 : vector<1x64xf32> to vector<2x64xf32>
    %21 = arith.addf %18, %20 : vector<2x64xf32>
    %cst_16 = arith.constant 0.000000e+00 : f32
    %22 = vector.broadcast %cst_16 : f32 to vector<2x64xf32>
    %23 = arith.maximumf %21, %22 : vector<2x64xf32>
    %c0_17 = arith.constant 0 : index
    %c0_18 = arith.constant 0 : index
    %24 = vector.load %arg8[%c0_17, %c0_18] : memref<1x64xf32, #tpu.memory_space<vmem>>, vector<1x64xf32>
    %25 = vector.broadcast %24 : vector<1x64xf32> to vector<2x64xf32>
    %26 = arith.mulf %23, %25 : vector<2x64xf32>
    %cst_19 = arith.constant dense<0.000000e+00> : vector<2xf32>
    %27 = vector.multi_reduction <add>, %26, %cst_19 [1] : vector<2x64xf32> to vector<2xf32>
    %28 = vector.shape_cast %27 : vector<2xf32> to vector<2x1xf32>
    %c0_20 = arith.constant 0 : index
    %c0_21 = arith.constant 0 : index
    %29 = vector.load %arg9[%c0_20, %c0_21] : memref<1x1xf32, #tpu.memory_space<vmem>>, vector<1x1xf32>
    %30 = vector.broadcast %29 : vector<1x1xf32> to vector<2x1xf32>
    %31 = arith.addf %28, %30 : vector<2x1xf32>
    %32 = arith.negf %31 : vector<2x1xf32>
    %33 = math.exp %32 : vector<2x1xf32>
    %cst_22 = arith.constant 1.000000e+00 : f32
    %34 = vector.broadcast %cst_22 : f32 to vector<2x1xf32>
    %35 = arith.addf %34, %33 : vector<2x1xf32>
    %36 = arith.divf %34, %35 : vector<2x1xf32>
    %c0_23 = arith.constant 0 : index
    %c0_24 = arith.constant 0 : index
    %37 = vector.load %arg10[%c0_23, %c0_24] : memref<2x1xf32, #tpu.memory_space<vmem>>, vector<2x1xf32>
    tpu.vector_store %arg10[%c0_23, %c0_24], %36 {strides = array<i32>} : memref<2x1xf32, #tpu.memory_space<vmem>>, vector<2x1xf32>,
    return
  }
  func.func @transform_0(%arg0: i32) -> (i32, i32) {
    %c0_i32 = arith.constant 0 : i32
    %c0_i32_0 = arith.constant 0 : i32
    return %arg0, %c0_i32 : i32, i32
  }
  func.func @transform_1(%arg0: i32) -> (i32, i32) {
    %c0_i32 = arith.constant 0 : i32
    %c0_i32_0 = arith.constant 0 : i32
    %c0_i32_1 = arith.constant 0 : i32
    return %c0_i32, %c0_i32_0 : i32, i32
  }
  func.func @transform_2(%arg0: i32) -> (i32, i32) {
    %c0_i32 = arith.constant 0 : i32
    %c0_i32_0 = arith.constant 0 : i32
    %c0_i32_1 = arith.constant 0 : i32
    return %c0_i32, %c0_i32_0 : i32, i32
  }
  func.func @transform_3(%arg0: i32) -> (i32, i32) {
    %c0_i32 = arith.constant 0 : i32
    %c0_i32_0 = arith.constant 0 : i32
    %c0_i32_1 = arith.constant 0 : i32
    return %c0_i32, %c0_i32_0 : i32, i32
  }
  func.func @transform_4(%arg0: i32) -> (i32, i32) {
    %c0_i32 = arith.constant 0 : i32
    %c0_i32_0 = arith.constant 0 : i32
    %c0_i32_1 = arith.constant 0 : i32
    return %c0_i32, %c0_i32_0 : i32, i32
  }
  func.func @transform_5(%arg0: i32) -> (i32, i32) {
    %c0_i32 = arith.constant 0 : i32
    %c0_i32_0 = arith.constant 0 : i32
    %c0_i32_1 = arith.constant 0 : i32
    return %c0_i32, %c0_i32_0 : i32, i32
  }
  func.func @transform_6(%arg0: i32) -> (i32, i32) {
    %c0_i32 = arith.constant 0 : i32
    %c0_i32_0 = arith.constant 0 : i32
    %c0_i32_1 = arith.constant 0 : i32
    return %c0_i32, %c0_i32_0 : i32, i32
  }
  func.func @transform_7(%arg0: i32) -> (i32, i32) {
    %c0_i32 = arith.constant 0 : i32
    %c0_i32_0 = arith.constant 0 : i32
    %c0_i32_1 = arith.constant 0 : i32
    return %c0_i32, %c0_i32_0 : i32, i32
  }
  func.func @transform_8(%arg0: i32) -> (i32, i32) {
    %c0_i32 = arith.constant 0 : i32
    %c0_i32_0 = arith.constant 0 : i32
    %c0_i32_1 = arith.constant 0 : i32
    return %c0_i32, %c0_i32_0 : i32, i32
  }
  func.func @transform_9(%arg0: i32) -> (i32, i32) {
    %c0_i32 = arith.constant 0 : i32
    %c0_i32_0 = arith.constant 0 : i32
    return %arg0, %c0_i32 : i32, i32
  }
}

</mosaic_0001>

<bundles_post_ra>
// kernel: tpu_custom_call.1
= control target key start
LH: loop header
LB: loop body
LE: loop exit
PB: predicated region body
PF: predicated region fallthrough
CT: control target
= control target key end

     0   :  { %s4749_s0 = inlined_call_operand.hbm [shape: f32[2,768], index: 0, kind: input, shape index: {}]   ;;  %s4750_s1 = inlined_call_operand.hbm [shape: bf16[768,768], index: 1, kind: input, shape index: {}]   ;;  %s4751_s2 = inlined_call_operand.hbm [shape: f32[1,768], index: 2, kind: input, shape index: {}]   ;;  %s4752_s3 = inlined_call_operand.hbm [shape: bf16[768,256], index: 3, kind: input, shape index: {}]   ;;  %s4753_s4 = inlined_call_operand.hbm [shape: f32[1,256], index: 4, kind: input, shape index: {}]   ;;  %s4754_s5 = inlined_call_operand.vmem [shape: bf16[256,64], index: 5, kind: input, shape index: {}]   ;;  %s4755_s6 = inlined_call_operand.hbm [shape: f32[1,64], index: 6, kind: input, shape index: {}]   ;;  %s4756_s7 = inlined_call_operand.hbm [shape: f32[1,64], index: 7, kind: input, shape index: {}]   ;;  %s4757_s8 = inlined_call_operand.<no memory space> [shape: f32[1,1], index: 8, kind: input, shape index: {}]   ;;  %s4758_s9 = inlined_call_operand.vmem [shape: f32[2,1], index: 9, kind: output, shape index: {}]  }
   0x1   :  { %v14_v0 = vstv %s4757_s8 }
   0x2   :  { %15 = vst [vmem:[#allocation2] sm:$0x1] %v14_v0 }
   0x3   :  { %16 = vsyncpa [#allocation4], 0 }
   0x4   :  { %17 = vsyncpa [#allocation6], 0 }
   0x5   :  { %18 = vsyncpa [#allocation9], 0 }
   0x6   :  { %19 = vsyncpa [#allocation12], 0  ;;  %s4479_s11 = smov [#allocation5]   ;;  %s4317_s15 = scalar_lea.hbm %s4750_s1, 36864 }
   0x7   :  { %s35_s12 = sshll.u32 %s4479_s11, 4  ;;  %p4318_p0 = scmp.ne.s32.totalorder %s4750_s1, %s4317_s15  ;;  %s36_s12 = int_to_ptr.vmem [resolvable:$true] %s35_s12 }
   0x8   :  { %p4321_p1 = scmp.lt.u32.totalorder %s4317_s15, %s4750_s1 }
   0xa   :  { %p4323_p2 = pnand %p4321_p1, %p4318_p0 }
   0xc   :  { %4326 = shalt.err (!%p4323_p2)
}
   0xd   :  { %s4327_s8 = scalar_lea.vmem %s36_s12, 36864  ;;  %p4332_p4 = scmp.lt.s32.totalorder %s36_s12, %s36_s12 }
   0xe   :  { %p4328_p3 = scmp.ne.s32.totalorder %s36_s12, %s4327_s8  ;;  %p4333_p5 = scmp.lt.s32.totalorder %s4327_s8, %s4327_s8 }
  0x10   :  { %p4334_p6 = por %p4333_p5, %p4332_p4 }
  0x12   :  { %p4335_p7 = pnand %p4334_p6, %p4328_p3 }
  0x14   :  { %4338 = shalt.err (!%p4335_p7)
}
  0x15   :  { %s4480_s20 = smov 384   ;;  %s4481_s21 = smov 24  }
  0x16   :  { %41 = dma.hbm_to_vmem [thread:$0]  %s4750_s1, 36864, %s36_s12, [#allocation6], %s4480_s20, %s4480_s20, %s4481_s21  }
  0x17   :  { %s4482_s24 = smov [#allocation8]   ;;  %s4339_s28 = scalar_lea.hbm %s4752_s3, 12288 }
  0x18   :  { %s57_s25 = sshll.u32 %s4482_s24, 4  ;;  %p4340_p8 = scmp.ne.s32.totalorder %s4752_s3, %s4339_s28  ;;  %s58_s25 = int_to_ptr.vmem [resolvable:$true] %s57_s25 }
  0x19   :  { %p4343_p9 = scmp.lt.u32.totalorder %s4339_s28, %s4752_s3 }
  0x1b   :  { %p4345_p10 = pnand %p4343_p9, %p4340_p8 }
  0x1d   :  { %4348 = shalt.err (!%p4345_p10)
}
  0x1e   :  { %s4349_s13 = scalar_lea.vmem %s58_s25, 12288  ;;  %p4354_p12 = scmp.lt.s32.totalorder %s58_s25, %s58_s25 }
  0x1f   :  { %p4350_p11 = scmp.ne.s32.totalorder %s58_s25, %s4349_s13  ;;  %p4355_p13 = scmp.lt.s32.totalorder %s4349_s13, %s4349_s13 }
  0x21   :  { %p4356_p0 = por %p4355_p13, %p4354_p12 }
  0x23   :  { %p4357_p1 = pnand %p4356_p0, %p4350_p11 }
  0x25   :  { %4360 = shalt.err (!%p4357_p1)
}
  0x26   :  { %s4483_s1 = smov 128   ;;  %s4484_s12 = smov 8  }
  0x27   :  { %63 = dma.hbm_to_vmem [thread:$0]  %s4752_s3, 12288, %s58_s25, [#allocation9], %s4483_s1, %s4483_s1, %s4484_s12  }
  0x28   :  { %s4485_s16 = smov [#allocation11]   ;;  %s4486_s18 = smov [#allocation3]  }
  0x29   :  { %s82_s17 = sshll.u32 %s4485_s16, 4  ;;  %s26_s19 = sshll.u32 %s4486_s18, 4  ;;  %s83_s17 = int_to_ptr.vmem [resolvable:$true] %s82_s17  ;;  %s27_s19 = int_to_ptr.vmem [resolvable:$true] %s26_s19 }
  0x2a   :  { %s4361_s21 = scalar_lea.hbm %s4755_s6, 16 }
  0x2b   :  { %p4362_p2 = scmp.ne.s32.totalorder %s4755_s6, %s4361_s21  ;;  %p4365_p3 = scmp.lt.u32.totalorder %s4361_s21, %s4755_s6 }
  0x2d   :  { %p4367_p4 = pnand %p4365_p3, %p4362_p2 }
  0x2f   :  { %4370 = shalt.err (!%p4367_p4)
}
  0x30   :  { %s4371_s3 = scalar_lea.vmem %s83_s17, 16  ;;  %s4375_s25 = scalar_lea.vmem %s83_s17, 32 }
  0x31   :  { %p4372_p5 = scmp.ne.s32.totalorder %s83_s17, %s4371_s3  ;;  %p4376_p6 = scmp.lt.s32.totalorder %s83_s17, %s83_s17 }
  0x32   :  { %p4377_p7 = scmp.lt.s32.totalorder %s4375_s25, %s4371_s3 }
  0x34   :  { %p4378_p8 = por %p4377_p7, %p4376_p6 }
  0x36   :  { %p4379_p9 = pnand %p4378_p8, %p4372_p5 }
  0x38   :  { %4382 = shalt.err (!%p4379_p9)
}
  0x39   :  { %85 = dma.hbm_to_vmem [thread:$0]  %s4755_s6, 16, %s83_s17, [#allocation12]  }
  0x3a   :  { %s4383_s10 = scalar_lea.hbm %s4749_s0, 192 }
  0x3b   :  { %p4384_p10 = scmp.ne.s32.totalorder %s4749_s0, %s4383_s10  ;;  %p4387_p11 = scmp.lt.u32.totalorder %s4383_s10, %s4749_s0 }
  0x3d   :  { %p4389_p12 = pnand %p4387_p11, %p4384_p10 }
  0x3f   :  { %4392 = shalt.err (!%p4389_p12)
}
  0x40   :  { %s4393_s14 = scalar_lea.vmem %s27_s19, 192  ;;  %p4398_p0 = scmp.lt.s32.totalorder %s27_s19, %s27_s19 }
  0x41   :  { %p4394_p13 = scmp.ne.s32.totalorder %s27_s19, %s4393_s14  ;;  %p4399_p1 = scmp.lt.s32.totalorder %s4393_s14, %s4393_s14 }
  0x43   :  { %p4400_p2 = por %p4399_p1, %p4398_p0 }
  0x45   :  { %p4401_p3 = pnand %p4400_p2, %p4394_p13 }
  0x47   :  { %4404 = shalt.err (!%p4401_p3)
}
  0x48   :  { %29 = dma.hbm_to_vmem [thread:$0]  %s4749_s0, 192, %s27_s19, [#allocation4]  }
  0x49   :  { %s4487_s16 = smov [#allocation7]   ;;  %s4488_s18 = smov [#allocation10]  }
  0x4a   :  { %s48_s17 = sshll.u32 %s4487_s16, 4  ;;  %s70_s8 = sshll.u32 %s4488_s18, 4  ;;  %s49_s17 = int_to_ptr.vmem [resolvable:$true] %s48_s17  ;;  %s71_s8 = int_to_ptr.vmem [resolvable:$true] %s70_s8 }
  0x4b   :  { %s4405_s22 = scalar_lea.hbm %s4751_s2, 96 }
  0x4c   :  { %p4406_p4 = scmp.ne.s32.totalorder %s4751_s2, %s4405_s22  ;;  %p4409_p5 = scmp.lt.u32.totalorder %s4405_s22, %s4751_s2 }
  0x4e   :  { %p4411_p6 = pnand %p4409_p5, %p4406_p4 }
  0x50   :  { %4414 = shalt.err (!%p4411_p6)
}
  0x51   :  { %s4415_s0 = scalar_lea.vmem %s49_s17, 96  ;;  %p4420_p8 = scmp.lt.s32.totalorder %s49_s17, %s49_s17 }
  0x52   :  { %p4416_p7 = scmp.ne.s32.totalorder %s49_s17, %s4415_s0  ;;  %p4421_p9 = scmp.lt.s32.totalorder %s4415_s0, %s4415_s0 }
  0x54   :  { %p4422_p10 = por %p4421_p9, %p4420_p8 }
  0x56   :  { %p4423_p11 = pnand %p4422_p10, %p4416_p7 }
  0x58   :  { %4426 = shalt.err (!%p4423_p11)
}
  0x59   :  { %51 = dma.hbm_to_vmem [thread:$0]  %s4751_s2, 96, %s49_s17, [#allocation6]  }
  0x5a   :  { %s4427_s29 = scalar_lea.hbm %s4753_s4, 32 }
  0x5b   :  { %p4428_p12 = scmp.ne.s32.totalorder %s4753_s4, %s4427_s29  ;;  %p4431_p13 = scmp.lt.u32.totalorder %s4427_s29, %s4753_s4 }
  0x5d   :  { %p4433_p0 = pnand %p4431_p13, %p4428_p12 }
  0x5f   :  { %4436 = shalt.err (!%p4433_p0)
}
  0x60   :  { %s4437_s1 = scalar_lea.vmem %s71_s8, 32  ;;  %p4442_p2 = scmp.lt.s32.totalorder %s71_s8, %s71_s8 }
  0x61   :  { %p4438_p1 = scmp.ne.s32.totalorder %s71_s8, %s4437_s1  ;;  %p4443_p3 = scmp.lt.s32.totalorder %s4437_s1, %s4437_s1 }
  0x63   :  { %p4444_p4 = por %p4443_p3, %p4442_p2 }
  0x65   :  { %p4445_p5 = pnand %p4444_p4, %p4438_p1 }
  0x67   :  { %4448 = shalt.err (!%p4445_p5)
}
  0x68   :  { %73 = dma.hbm_to_vmem [thread:$0]  %s4753_s4, 32, %s71_s8, [#allocation9]  }
  0x69   :  { %s4489_s14 = smov [#allocation13]   ;;  %s4449_s17 = scalar_lea.hbm %s4756_s7, 16 }
  0x6a   :  { %s92_s6 = sshll.u32 %s4489_s14, 4  ;;  %p4450_p6 = scmp.ne.s32.totalorder %s4756_s7, %s4449_s17  ;;  %s93_s6 = int_to_ptr.vmem [resolvable:$true] %s92_s6 }
  0x6b   :  { %p4453_p7 = scmp.lt.u32.totalorder %s4449_s17, %s4756_s7 }
  0x6d   :  { %p4455_p8 = pnand %p4453_p7, %p4450_p6 }
  0x6f   :  { %4458 = shalt.err (!%p4455_p8)
}
  0x70   :  { %s4459_s23 = scalar_lea.vmem %s93_s6, 16  ;;  %s4463_s4 = scalar_lea.vmem %s93_s6, 32 }
  0x71   :  { %p4460_p9 = scmp.ne.s32.totalorder %s93_s6, %s4459_s23  ;;  %p4464_p10 = scmp.lt.s32.totalorder %s93_s6, %s93_s6 }
  0x72   :  { %p4465_p11 = scmp.lt.s32.totalorder %s4463_s4, %s4459_s23 }
  0x74   :  { %p4466_p12 = por %p4465_p11, %p4464_p10 }
  0x76   :  { %p4467_p13 = pnand %p4466_p12, %p4460_p9 }
  0x78   :  { %4470 = shalt.err (!%p4467_p13)
}
  0x79   :  { %95 = dma.hbm_to_vmem [thread:$0]  %s4756_s7, 16, %s93_s6, [#allocation12]  }
  0x7a   :  { %4471 = dma.done.wait [#allocation4], 192  }
  0x7b   :  { %4472 = vsyncadd [#allocation4], 4294967104 }
  0x7c   :  { %4473 = dma.done.wait [#allocation6], 36960  }
  0x7d   :  { %4474 = vsyncadd [#allocation6], 4294930336 }
  0x7e   :  { %4475 = dma.done.wait [#allocation9], 12320  }
  0x7f   :  { %4476 = vsyncadd [#allocation9], 4294954976 }
  0x80   :  { %4477 = dma.done.wait [#allocation12], 32  }
  0x81   :  { %4478 = vsyncadd [#allocation12], 4294967264  ;;  %v3708_v1 = vld [vmem:[#allocation5 + $0x4] ss:$24 sps:$4 sm:$0xff]   ;;  %v3712_v3 = vld [vmem:[#allocation5] ss:$24 sps:$4 sm:$0xff]   ;;  %v128_v39 = vlaneseq }
  0x82   :  { %v3710_v2 = vld [vmem:[#allocation5 + $0xc] ss:$24 sps:$4 sm:$0xff]   ;;  %1921 = vmatprep.subr.bf16.mxu0 %v3708_v1  ;;  %v3713_v4 = vld [vmem:[#allocation5 + $0x8] ss:$24 sps:$4 sm:$0xff]   ;;  %v3716_v6 = vld [vmem:[#allocation5 + $0x3c] ss:$24 sps:$4 sm:$0xff]  }
  0x83   :  { %2044 = vmatprep.subr.bf16.mxu1 %v3710_v2  ;;  %v3714_v5 = vld [vmem:[#allocation5 + $0x34] ss:$24 sps:$4 sm:$0xff]   ;;  %1922 = vmatpush1.bf16.msra.mxu0 %v3712_v3  ;;  %v3718_v7 = vld [vmem:[#allocation5 + $0x30] ss:$24 sps:$4 sm:$0xff]   ;;  %v3720_v9 = vld [vmem:[#allocation5 + $0x64] ss:$24 sps:$4 sm:$0xff]  }
  0x84   :  { %2045 = vmatpush1.bf16.msra.mxu1 %v3713_v4  ;;  %1923 = vmatprep.subr.bf16.mxu0 %v3714_v5  ;;  %v3719_v8 = vld [vmem:[#allocation5 + $0x38] ss:$24 sps:$4 sm:$0xff]   ;;  %v3722_v10 = vld [vmem:[#allocation5 + $0x6c] ss:$24 sps:$4 sm:$0xff]   ;;  %v3725_v12 = vld [vmem:[#allocation5 + $0x68] ss:$24 sps:$4 sm:$0xff]  }
  0x85   :  { %2046 = vmatprep.subr.bf16.mxu1 %v3716_v6  ;;  %v3724_v11 = vld [vmem:[#allocation5 + $0x60] ss:$24 sps:$4 sm:$0xff]   ;;  %v3726_v13 = vld [vmem:[#allocation5 + $0x94] ss:$24 sps:$4 sm:$0xff]   ;;  %v3730_v15 = vld [vmem:[#allocation5 + $0x90] ss:$24 sps:$4 sm:$0xff]  }
  0x86   :  { %v3728_v14 = vld [vmem:[#allocation5 + $0x9c] ss:$24 sps:$4 sm:$0xff]   ;;  %v3731_v16 = vld [vmem:[#allocation5 + $0x98] ss:$24 sps:$4 sm:$0xff]   ;;  %v3734_v18 = vld [vmem:[#allocation5 + $0xcc] ss:$24 sps:$4 sm:$0xff]  }
  0x87   :  { %1924 = vmatpush1.bf16.msra.mxu0 %v3718_v7  ;;  %v3732_v17 = vld [vmem:[#allocation5 + $0xc4] ss:$24 sps:$4 sm:$0xff]   ;;  %v3736_v19 = vld [vmem:[#allocation5 + $0xc0] ss:$24 sps:$4 sm:$0xff]   ;;  %v3738_v21 = vld [vmem:[#allocation5 + $0xf4] ss:$24 sps:$4 sm:$0xff]  }
  0x88   :  { %2047 = vmatpush1.bf16.msra.mxu1 %v3719_v8  ;;  %1925 = vmatprep.subr.bf16.mxu0 %v3720_v9  ;;  %v3737_v20 = vld [vmem:[#allocation5 + $0xc8] ss:$24 sps:$4 sm:$0xff]   ;;  %v3740_v22 = vld [vmem:[#allocation5 + $0xfc] ss:$24 sps:$4 sm:$0xff]   ;;  %v3743_v24 = vld [vmem:[#allocation5 + $0xf8] ss:$24 sps:$4 sm:$0xff]  }
  0x89   :  { %2048 = vmatprep.subr.bf16.mxu1 %v3722_v10  ;;  %v3742_v23 = vld [vmem:[#allocation5 + $0xf0] ss:$24 sps:$4 sm:$0xff]   ;;  %v3744_v25 = vld [vmem:[#allocation5 + $0x124] ss:$24 sps:$4 sm:$0xff]   ;;  %v3748_v27 = vld [vmem:[#allocation5 + $0x120] ss:$24 sps:$4 sm:$0xff]  }
  0x8a   :  { %v3746_v26 = vld [vmem:[#allocation5 + $0x12c] ss:$24 sps:$4 sm:$0xff]   ;;  %v3749_v28 = vld [vmem:[#allocation5 + $0x128] ss:$24 sps:$4 sm:$0xff]   ;;  %v3752_v30 = vld [vmem:[#allocation5 + $0x15c] ss:$24 sps:$4 sm:$0xff]  }
  0x8b   :  { %1926 = vmatpush1.bf16.msra.mxu0 %v3724_v11  ;;  %v3750_v29 = vld [vmem:[#allocation5 + $0x154] ss:$24 sps:$4 sm:$0xff]   ;;  %v3754_v31 = vld [vmem:[#allocation5 + $0x150] ss:$24 sps:$4 sm:$0xff]   ;;  %v3756_v33 = vld [vmem:[#allocation5 + $0x184] ss:$24 sps:$4 sm:$0xff]  }
  0x8c   :  { %2049 = vmatpush1.bf16.msra.mxu1 %v3725_v12  ;;  %1927 = vmatprep.subr.bf16.mxu0 %v3726_v13  ;;  %v3755_v32 = vld [vmem:[#allocation5 + $0x158] ss:$24 sps:$4 sm:$0xff]   ;;  %v3758_v34 = vld [vmem:[#allocation5 + $0x18c] ss:$24 sps:$4 sm:$0xff]   ;;  %v3761_v36 = vld [vmem:[#allocation5 + $0x188] ss:$24 sps:$4 sm:$0xff]  }
  0x8d   :  { %2050 = vmatprep.subr.bf16.mxu1 %v3728_v14  ;;  %v3760_v35 = vld [vmem:[#allocation5 + $0x180] ss:$24 sps:$4 sm:$0xff]   ;;  %v4490_v37 = vmov 1983009808   ;;  %v3762_v40 = vld [vmem:[#allocation5 + $0x1b4] ss:$24 sps:$4 sm:$0xff]  }
  0x8e   :  { %v126_v38 = vunpack.c.l.s4 %v4490_v37  ;;  %v3764_v41 = vld [vmem:[#allocation5 + $0x1bc] ss:$24 sps:$4 sm:$0xff]   ;;  %v3766_v42 = vld [vmem:[#allocation5 + $0x1b0] ss:$24 sps:$4 sm:$0xff]   ;;  %v4628_v44 = vshrl.u32 %v128_v39, 7  ;;  %vm3201_vm0 = vcmask 517120  }
  0x8f   :  { %1928 = vmatpush1.bf16.msra.mxu0 %v3730_v15  ;;  %v3767_v45 = vld [vmem:[#allocation5 + $0x1b8] ss:$24 sps:$4 sm:$0xff]   ;;  %v3768_v46 = vld [vmem:[#allocation5 + $0x1e4] ss:$24 sps:$4 sm:$0xff]   ;;  %v3773_v49 = vld [vmem:[#allocation5 + $0x1e8] ss:$24 sps:$4 sm:$0xff]  }
  0x90   :  { %2051 = vmatpush1.bf16.msra.mxu1 %v3731_v16  ;;  %1929 = vmatprep.subr.bf16.mxu0 %v3732_v17  ;;  %v127_v43 = vunpack.c.0.s8 %v126_v38  ;;  %v3770_v47 = vld [vmem:[#allocation5 + $0x1ec] ss:$24 sps:$4 sm:$0xff]   ;;  %v3772_v48 = vld [vmem:[#allocation5 + $0x1e0] ss:$24 sps:$4 sm:$0xff]   ;;  %v3776_v52 = vld [vmem:[#allocation5 + $0x21c] ss:$24 sps:$4 sm:$0xff]  }
  0x91   :  { %2052 = vmatprep.subr.bf16.mxu1 %v3734_v18  ;;  %v3774_v51 = vld [vmem:[#allocation5 + $0x214] ss:$24 sps:$4 sm:$0xff]   ;;  %v3778_v54 = vld [vmem:[#allocation5 + $0x210] ss:$24 sps:$4 sm:$0xff]   ;;  %v3780_v57 = vld [vmem:[#allocation5 + $0x244] ss:$24 sps:$4 sm:$0xff]  }
  0x92   :  { %v130_v50 = vsub.s32 %v127_v43, %v4628_v44  ;;  %v120_v53 = vld [vmem:[#allocation3] sm:$0xff]  ;;  %v3782_v58 = vld [vmem:[#allocation5 + $0x24c] ss:$24 sps:$4 sm:$0xff]   ;;  %v3785_v62 = vld [vmem:[#allocation5 + $0x248] ss:$24 sps:$4 sm:$0xff]   ;;  %vm3219_vm1 = vcmask 1024  }
  0x93   :  { %1930 = vmatpush1.bf16.msra.mxu0 %v3736_v19  ;;  %v3779_v56 = vld [vmem:[#allocation5 + $0x218] ss:$24 sps:$4 sm:$0xff]   ;;  %v3786_v63 = vld [vmem:[#allocation5 + $0x274] ss:$24 sps:$4 sm:$0xff]   ;;  %v3792_v3 = vld [vmem:[#allocation5 + $0x2a4] ss:$24 sps:$4 sm:$0xff]   ;;  %v124_v5 = vcombine.high %v120_v53, %v120_v53 }
  0x94   :  { %2053 = vmatpush1.bf16.msra.mxu1 %v3737_v20  ;;  %1931 = vmatprep.subr.bf16.mxu0 %v3738_v21  ;;  %v131_v55 = vrot.slane %v120_v53, %v130_v50  ;;  %v3784_v60 = vld [vmem:[#allocation5 + $0x240] ss:$24 sps:$4 sm:$0xff]   ;;  %v3788_v0 = vld [vmem:[#allocation5 + $0x27c] ss:$24 sps:$4 sm:$0xff]   ;;  %v3790_v1 = vld [vmem:[#allocation5 + $0x270] ss:$24 sps:$4 sm:$0xff]  }
  0x95   :  { %2054 = vmatprep.subr.bf16.mxu1 %v3740_v22  ;;  %v3791_v2 = vld [vmem:[#allocation5 + $0x278] ss:$24 sps:$4 sm:$0xff]   ;;  %v3794_v4 = vld [vmem:[#allocation5 + $0x2ac] ss:$24 sps:$4 sm:$0xff]   ;;  %v3797_v7 = vld [vmem:[#allocation5 + $0x2a8] ss:$24 sps:$4 sm:$0xff]   ;;  %v4635_v10 = vrot.slane %v124_v5, %v130_v50 }
  0x96   :  { %v139_v59 = vcombine.high %v131_v55, %v131_v55  ;;  %v3796_v6 = vld [vmem:[#allocation5 + $0x2a0] ss:$24 sps:$4 sm:$0xff]   ;;  %v3798_v8 = vld [vmem:[#allocation5 + $0x2d4] ss:$24 sps:$4 sm:$0xff]   ;;  %v3802_v11 = vld [vmem:[#allocation5 + $0x2d0] ss:$24 sps:$4 sm:$0xff]   ;;  %v4639_v17 = vpack.c.bf16 %v131_v55, %v131_v55 }
  0x97   :  { %1932 = vmatpush1.bf16.msra.mxu0 %v3742_v23  ;;  %v3800_v9 = vld [vmem:[#allocation5 + $0x2dc] ss:$24 sps:$4 sm:$0xff]   ;;  %v3803_v12 = vld [vmem:[#allocation5 + $0x2d8] ss:$24 sps:$4 sm:$0xff]   ;;  %v3809_v14 = vld [vmem:[#allocation5 + $0x30c] ss:$24 sps:$4 sm:$0xff]   ;;  %v140_v15 = vcombine.high %v4635_v10, %v4635_v10 }
  0x98   :  { %2055 = vmatpush1.bf16.msra.mxu1 %v3743_v24  ;;  %1933 = vmatprep.subr.bf16.mxu0 %v3744_v25  ;;  %v4631_v61 = vpack.c.bf16 %v139_v59, %v139_v59  ;;  %v3806_v13 = vld [vmem:[#allocation5 + $0x304] ss:$24 sps:$4 sm:$0xff]   ;;  %v3804_v16 = vld [vmem:[#allocation5 + $0x300] ss:$24 sps:$4 sm:$0xff]   ;;  %v3812_v19 = vld [vmem:[#allocation5 + $0x334] ss:$24 sps:$4 sm:$0xff]  }
  0x99   :  { %2056 = vmatprep.subr.bf16.mxu1 %v3746_v26  ;;  %v3807_v18 = vld [vmem:[#allocation5 + $0x308] ss:$24 sps:$4 sm:$0xff]   ;;  %v3815_v20 = vld [vmem:[#allocation5 + $0x33c] ss:$24 sps:$4 sm:$0xff]   ;;  %v4641_v21 = vpack.c.bf16 %v140_v15, %v140_v15  ;;  %v3813_v23 = vld [vmem:[#allocation5 + $0x338] ss:$24 sps:$4 sm:$0xff]  }
  0x9a   :  { %1953 = vmatprep.mubr.bf16.mxu0 %v4631_v61  ;;  %2076 = vmatprep.mubr.bf16.mxu1 %v4631_v61  ;;  %v3810_v22 = vld [vmem:[#allocation5 + $0x330] ss:$24 sps:$4 sm:$0xff]   ;;  %v3818_v24 = vld [vmem:[#allocation5 + $0x364] ss:$24 sps:$4 sm:$0xff]   ;;  %v3816_v26 = vld [vmem:[#allocation5 + $0x360] ss:$24 sps:$4 sm:$0xff]  }
  0x9b   :  { %1934 = vmatpush1.bf16.msra.mxu0 %v3748_v27  ;;  %v3821_v25 = vld [vmem:[#allocation5 + $0x36c] ss:$24 sps:$4 sm:$0xff]   ;;  %v3819_v27 = vld [vmem:[#allocation5 + $0x368] ss:$24 sps:$4 sm:$0xff]   ;;  %v3839_v37 = vld [vmem:[#allocation5 + $0x3fc] ss:$24 sps:$4 sm:$0xff]  }
  0x9c   :  { %2057 = vmatpush1.bf16.msra.mxu1 %v3749_v28  ;;  %1935 = vmatprep.subr.bf16.mxu0 %v3750_v29  ;;  %v3824_v28 = vld [vmem:[#allocation5 + $0x394] ss:$24 sps:$4 sm:$0xff]   ;;  %v3834_v38 = vld [vmem:[#allocation5 + $0x3f0] ss:$24 sps:$4 sm:$0xff]   ;;  %v3864_v59 = vld [vmem:[#allocation5 + $0x4e0] ss:$24 sps:$4 sm:$0xff]  }
  0x9d   :  { %2058 = vmatprep.subr.bf16.mxu1 %v3752_v30  ;;  %v3827_v29 = vld [vmem:[#allocation5 + $0x39c] ss:$24 sps:$4 sm:$0xff]   ;;  %v3822_v30 = vld [vmem:[#allocation5 + $0x390] ss:$24 sps:$4 sm:$0xff]   ;;  %v3857_v50 = vld [vmem:[#allocation5 + $0x48c] ss:$24 sps:$4 sm:$0xff]  }
  0x9e   :  { %v3837_v39 = vld [vmem:[#allocation5 + $0x3f8] ss:$24 sps:$4 sm:$0xff]   ;;  %v3843_v43 = vld [vmem:[#allocation5 + $0x428] ss:$24 sps:$4 sm:$0xff]   ;;  %v3860_v53 = vld [vmem:[#allocation5 + $0x4b4] ss:$24 sps:$4 sm:$0xff]  }
  0x9f   :  { %1936 = vmatpush1.bf16.msra.mxu0 %v3754_v31  ;;  %v3825_v31 = vld [vmem:[#allocation5 + $0x398] ss:$24 sps:$4 sm:$0xff]   ;;  %v3879_v5 = vld [vmem:[#allocation5 + $0x548] ss:$24 sps:$4 sm:$0xff]   ;;  %v3896_v15 = vld [vmem:[#allocation5 + $0x5d4] ss:$24 sps:$4 sm:$0xff]  }
  0xa0   :  { %2059 = vmatpush1.bf16.msra.mxu1 %v3755_v32  ;;  %1937 = vmatprep.subr.bf16.mxu0 %v3756_v33  ;;  %v3830_v32 = vld [vmem:[#allocation5 + $0x3c4] ss:$24 sps:$4 sm:$0xff]   ;;  %v3858_v55 = vld [vmem:[#allocation5 + $0x4b0] ss:$24 sps:$4 sm:$0xff]  }
  0xa1   :  { %2060 = vmatprep.subr.bf16.mxu1 %v3758_v34  ;;  %v3833_v33 = vld [vmem:[#allocation5 + $0x3cc] ss:$24 sps:$4 sm:$0xff]   ;;  %v3828_v34 = vld [vmem:[#allocation5 + $0x3c0] ss:$24 sps:$4 sm:$0xff]  }
  0xa3   :  { %1938 = vmatpush1.bf16.msra.mxu0 %v3760_v35  ;;  %v3831_v35 = vld [vmem:[#allocation5 + $0x3c8] ss:$24 sps:$4 sm:$0xff]  }
  0xa4   :  { %2061 = vmatpush1.bf16.msra.mxu1 %v3761_v36  ;;  %1939 = vmatprep.subr.bf16.mxu0 %v3762_v40  ;;  %v3836_v36 = vld [vmem:[#allocation5 + $0x3f4] ss:$24 sps:$4 sm:$0xff]   ;;  %v3842_v40 = vld [vmem:[#allocation5 + $0x424] ss:$24 sps:$4 sm:$0xff]  }
  0xa5   :  { %2062 = vmatprep.subr.bf16.mxu1 %v3764_v41  ;;  %v3845_v41 = vld [vmem:[#allocation5 + $0x42c] ss:$24 sps:$4 sm:$0xff]  }
  0xa7   :  { %1940 = vmatpush1.bf16.msra.mxu0 %v3766_v42  ;;  %v3840_v42 = vld [vmem:[#allocation5 + $0x420] ss:$24 sps:$4 sm:$0xff]  }
  0xa8   :  { %2063 = vmatpush1.bf16.msra.mxu1 %v3767_v45  ;;  %1941 = vmatprep.subr.bf16.mxu0 %v3768_v46  ;;  %v3848_v45 = vld [vmem:[#allocation5 + $0x454] ss:$24 sps:$4 sm:$0xff]  }
  0xa9   :  { %2064 = vmatprep.subr.bf16.mxu1 %v3770_v47  ;;  %v3851_v46 = vld [vmem:[#allocation5 + $0x45c] ss:$24 sps:$4 sm:$0xff]   ;;  %v3846_v47 = vld [vmem:[#allocation5 + $0x450] ss:$24 sps:$4 sm:$0xff]  }
  0xab   :  { %1942 = vmatpush1.bf16.msra.mxu0 %v3772_v48  ;;  %v3849_v48 = vld [vmem:[#allocation5 + $0x458] ss:$24 sps:$4 sm:$0xff]  }
  0xac   :  { %2065 = vmatpush1.bf16.msra.mxu1 %v3773_v49  ;;  %1943 = vmatprep.subr.bf16.mxu0 %v3774_v51  ;;  %v3854_v49 = vld [vmem:[#allocation5 + $0x484] ss:$24 sps:$4 sm:$0xff]   ;;  %v3852_v51 = vld [vmem:[#allocation5 + $0x480] ss:$24 sps:$4 sm:$0xff]  }
  0xad   :  { %2066 = vmatprep.subr.bf16.mxu1 %v3776_v52  ;;  %v3855_v52 = vld [vmem:[#allocation5 + $0x488] ss:$24 sps:$4 sm:$0xff]  }
  0xaf   :  { %1944 = vmatpush1.bf16.msra.mxu0 %v3778_v54  ;;  %v3863_v54 = vld [vmem:[#allocation5 + $0x4bc] ss:$24 sps:$4 sm:$0xff]  }
  0xb0   :  { %2067 = vmatpush1.bf16.msra.mxu1 %v3779_v56  ;;  %1945 = vmatprep.subr.bf16.mxu0 %v3780_v57  ;;  %v3861_v56 = vld [vmem:[#allocation5 + $0x4b8] ss:$24 sps:$4 sm:$0xff]   ;;  %v3866_v57 = vld [vmem:[#allocation5 + $0x4e4] ss:$24 sps:$4 sm:$0xff]  }
  0xb1   :  { %2068 = vmatprep.subr.bf16.mxu1 %v3782_v58  ;;  %v3869_v58 = vld [vmem:[#allocation5 + $0x4ec] ss:$24 sps:$4 sm:$0xff]  }
  0xb3   :  { %1946 = vmatpush1.bf16.msra.mxu0 %v3784_v60  ;;  %v3867_v60 = vld [vmem:[#allocation5 + $0x4e8] ss:$24 sps:$4 sm:$0xff]  }
  0xb4   :  { %2069 = vmatpush1.bf16.msra.mxu1 %v3785_v62  ;;  %1947 = vmatprep.subr.bf16.mxu0 %v3786_v63  ;;  %v3872_v62 = vld [vmem:[#allocation5 + $0x514] ss:$24 sps:$4 sm:$0xff]  }
  0xb5   :  { %2070 = vmatprep.subr.bf16.mxu1 %v3788_v0  ;;  %v3875_v63 = vld [vmem:[#allocation5 + $0x51c] ss:$24 sps:$4 sm:$0xff]   ;;  %v3870_v0 = vld [vmem:[#allocation5 + $0x510] ss:$24 sps:$4 sm:$0xff]  }
  0xb7   :  { %1948 = vmatpush1.bf16.msra.mxu0 %v3790_v1  ;;  %v3873_v1 = vld [vmem:[#allocation5 + $0x518] ss:$24 sps:$4 sm:$0xff]  }
  0xb8   :  { %2071 = vmatpush1.bf16.msra.mxu1 %v3791_v2  ;;  %1949 = vmatprep.subr.bf16.mxu0 %v3792_v3  ;;  %v3878_v2 = vld [vmem:[#allocation5 + $0x544] ss:$24 sps:$4 sm:$0xff]  }
  0xb9   :  { %2072 = vmatprep.subr.bf16.mxu1 %v3794_v4  ;;  %v3881_v3 = vld [vmem:[#allocation5 + $0x54c] ss:$24 sps:$4 sm:$0xff]   ;;  %v3876_v4 = vld [vmem:[#allocation5 + $0x540] ss:$24 sps:$4 sm:$0xff]  }
  0xbb   :  { %1950 = vmatpush1.bf16.msra.mxu0 %v3796_v6  ;;  %v3884_v6 = vld [vmem:[#allocation5 + $0x574] ss:$24 sps:$4 sm:$0xff]  }
  0xbc   :  { %2073 = vmatpush1.bf16.msra.mxu1 %v3797_v7  ;;  %1951 = vmatprep.subr.bf16.mxu0 %v3798_v8  ;;  %v3887_v7 = vld [vmem:[#allocation5 + $0x57c] ss:$24 sps:$4 sm:$0xff]   ;;  %v3882_v8 = vld [vmem:[#allocation5 + $0x570] ss:$24 sps:$4 sm:$0xff]  }
  0xbd   :  { %2074 = vmatprep.subr.bf16.mxu1 %v3800_v9  ;;  %v3885_v9 = vld [vmem:[#allocation5 + $0x578] ss:$24 sps:$4 sm:$0xff]  }
  0xbf   :  { %1952 = vmatpush1.bf16.msra.mxu0 %v3802_v11  ;;  %v3890_v11 = vld [vmem:[#allocation5 + $0x5a4] ss:$24 sps:$4 sm:$0xff]  }
  0xc0   :  { %2075 = vmatpush1.bf16.msra.mxu1 %v3803_v12  ;;  %1962 = vmatprep.subr.bf16.mxu0 %v3806_v13  ;;  %v3893_v12 = vld [vmem:[#allocation5 + $0x5ac] ss:$24 sps:$4 sm:$0xff]   ;;  %v3888_v13 = vld [vmem:[#allocation5 + $0x5a0] ss:$24 sps:$4 sm:$0xff]  }
  0xc1   :  { %2085 = vmatprep.subr.bf16.mxu1 %v3809_v14  ;;  %v3891_v14 = vld [vmem:[#allocation5 + $0x5a8] ss:$24 sps:$4 sm:$0xff]  }
  0xc2   :  { %1954 = vmatmul.mubr.bf16.vlgmr.msra.gmra.mrb[0].mxu0 %v4639_v17 }
  0xc3   :  { %2077 = vmatmul.mubr.bf16.vlgmr.msra.gmra.mrb[0].mxu1 %v4639_v17  ;;  %1963 = vmatpush1.bf16.msra.mxu0 %v3804_v16  ;;  %v3899_v16 = vld [vmem:[#allocation5 + $0x5dc] ss:$24 sps:$4 sm:$0xff]  }
  0xc4   :  { %2086 = vmatpush1.bf16.msra.mxu1 %v3807_v18  ;;  %1964 = vmatprep.subr.bf16.mxu0 %v3812_v19  ;;  %v3894_v18 = vld [vmem:[#allocation5 + $0x5d0] ss:$24 sps:$4 sm:$0xff]  }
  0xc5   :  { %2087 = vmatprep.subr.bf16.mxu1 %v3815_v20  ;;  %1994 = vmatprep.mubr.bf16.mxu0 %v4641_v21  ;;  %v3897_v19 = vld [vmem:[#allocation5 + $0x5d8] ss:$24 sps:$4 sm:$0xff]   ;;  %v3903_v20 = vld [vmem:[#allocation5 + $0x604] ss:$24 sps:$4 sm:$0xff]  }
  0xc6   :  { %2117 = vmatprep.mubr.bf16.mxu1 %v4641_v21 }
  0xc7   :  { %1965 = vmatpush1.bf16.msra.mxu0 %v3810_v22  ;;  %v3906_v22 = vld [vmem:[#allocation5 + $0x60c] ss:$24 sps:$4 sm:$0xff]  }
  0xc8   :  { %2088 = vmatpush1.bf16.msra.mxu1 %v3813_v23  ;;  %1966 = vmatprep.subr.bf16.mxu0 %v3818_v24  ;;  %v3901_v23 = vld [vmem:[#allocation5 + $0x600] ss:$24 sps:$4 sm:$0xff]  }
  0xc9   :  { %2089 = vmatprep.subr.bf16.mxu1 %v3821_v25  ;;  %v3904_v24 = vld [vmem:[#allocation5 + $0x608] ss:$24 sps:$4 sm:$0xff]   ;;  %v4649_v25 = vpack.c.bf16 %v4635_v10, %v4635_v10  ;;  %v3910_v10 = vld [vmem:[#allocation5 + $0x638] ss:$24 sps:$4 sm:$0xff]  }
  0xcb   :  { %1967 = vmatpush1.bf16.msra.mxu0 %v3816_v26  ;;  %v3909_v26 = vld [vmem:[#allocation5 + $0x634] ss:$24 sps:$4 sm:$0xff]  }
  0xcc   :  { %2090 = vmatpush1.bf16.msra.mxu1 %v3819_v27  ;;  %1968 = vmatprep.subr.bf16.mxu0 %v3824_v28  ;;  %v4651_v27 = vld.sshfl [vmem:[#allocation3 + $0x8] sm:$0x33 pattern:$0x76325410] }
  0xcd   :  { %2091 = vmatprep.subr.bf16.mxu1 %v3827_v29  ;;  %v3912_v28 = vld [vmem:[#allocation5 + $0x63c] ss:$24 sps:$4 sm:$0xff]   ;;  %v148_v29 = vcombine.high %v4651_v27, %v4651_v27 }
  0xcf   :  { %1969 = vmatpush1.bf16.msra.mxu0 %v3822_v30  ;;  %v3907_v30 = vld [vmem:[#allocation5 + $0x630] ss:$24 sps:$4 sm:$0xff]  }
  0xd0   :  { %2092 = vmatpush1.bf16.msra.mxu1 %v3825_v31  ;;  %1970 = vmatprep.subr.bf16.mxu0 %v3830_v32  ;;  %v4657_v31 = vpack.c.bf16 %v148_v29, %v148_v29  ;;  %v3915_v32 = vld [vmem:[#allocation5 + $0x664] ss:$24 sps:$4 sm:$0xff]   ;;  %v3991_v29 = vld [vmem:[#allocation5 + $0x8d0] ss:$24 sps:$4 sm:$0xff]  }
  0xd1   :  { %2093 = vmatprep.subr.bf16.mxu1 %v3833_v33  ;;  %v3918_v33 = vld [vmem:[#allocation5 + $0x66c] ss:$24 sps:$4 sm:$0xff]  }
  0xd3   :  { %1971 = vmatpush1.bf16.msra.mxu0 %v3828_v34  ;;  %v3913_v34 = vld [vmem:[#allocation5 + $0x660] ss:$24 sps:$4 sm:$0xff]  }
  0xd4   :  { %2094 = vmatpush1.bf16.msra.mxu1 %v3831_v35  ;;  %1972 = vmatprep.subr.bf16.mxu0 %v3836_v36  ;;  %v3916_v35 = vld [vmem:[#allocation5 + $0x668] ss:$24 sps:$4 sm:$0xff]   ;;  %v3921_v36 = vld [vmem:[#allocation5 + $0x694] ss:$24 sps:$4 sm:$0xff]  }
  0xd5   :  { %2095 = vmatprep.subr.bf16.mxu1 %v3839_v37  ;;  %v3924_v37 = vld [vmem:[#allocation5 + $0x69c] ss:$24 sps:$4 sm:$0xff]  }
  0xd7   :  { %1973 = vmatpush1.bf16.msra.mxu0 %v3834_v38  ;;  %v3919_v38 = vld [vmem:[#allocation5 + $0x690] ss:$24 sps:$4 sm:$0xff]  }
  0xd8   :  { %2096 = vmatpush1.bf16.msra.mxu1 %v3837_v39  ;;  %1974 = vmatprep.subr.bf16.mxu0 %v3842_v40  ;;  %v3922_v39 = vld [vmem:[#allocation5 + $0x698] ss:$24 sps:$4 sm:$0xff]   ;;  %v3927_v40 = vld [vmem:[#allocation5 + $0x6c4] ss:$24 sps:$4 sm:$0xff]  }
  0xd9   :  { %2097 = vmatprep.subr.bf16.mxu1 %v3845_v41  ;;  %v3930_v41 = vld [vmem:[#allocation5 + $0x6cc] ss:$24 sps:$4 sm:$0xff]  }
  0xdb   :  { %1975 = vmatpush1.bf16.msra.mxu0 %v3840_v42  ;;  %v3925_v42 = vld [vmem:[#allocation5 + $0x6c0] ss:$24 sps:$4 sm:$0xff]  }
  0xdc   :  { %2098 = vmatpush1.bf16.msra.mxu1 %v3843_v43  ;;  %1976 = vmatprep.subr.bf16.mxu0 %v3848_v45  ;;  %v3928_v43 = vld [vmem:[#allocation5 + $0x6c8] ss:$24 sps:$4 sm:$0xff]   ;;  %v3933_v45 = vld [vmem:[#allocation5 + $0x6f4] ss:$24 sps:$4 sm:$0xff]  }
  0xdd   :  { %2099 = vmatprep.subr.bf16.mxu1 %v3851_v46  ;;  %v3936_v46 = vld [vmem:[#allocation5 + $0x6fc] ss:$24 sps:$4 sm:$0xff]  }
  0xdf   :  { %1977 = vmatpush1.bf16.msra.mxu0 %v3846_v47  ;;  %v3931_v47 = vld [vmem:[#allocation5 + $0x6f0] ss:$24 sps:$4 sm:$0xff]  }
  0xe0   :  { %2100 = vmatpush1.bf16.msra.mxu1 %v3849_v48  ;;  %1978 = vmatprep.subr.bf16.mxu0 %v3854_v49  ;;  %v3934_v48 = vld [vmem:[#allocation5 + $0x6f8] ss:$24 sps:$4 sm:$0xff]   ;;  %v3939_v49 = vld [vmem:[#allocation5 + $0x724] ss:$24 sps:$4 sm:$0xff]  }
  0xe1   :  { %2101 = vmatprep.subr.bf16.mxu1 %v3857_v50  ;;  %v3942_v50 = vld [vmem:[#allocation5 + $0x72c] ss:$24 sps:$4 sm:$0xff]  }
  0xe3   :  { %1979 = vmatpush1.bf16.msra.mxu0 %v3852_v51  ;;  %v3937_v51 = vld [vmem:[#allocation5 + $0x720] ss:$24 sps:$4 sm:$0xff]  }
  0xe4   :  { %2102 = vmatpush1.bf16.msra.mxu1 %v3855_v52  ;;  %1980 = vmatprep.subr.bf16.mxu0 %v3860_v53  ;;  %v3940_v52 = vld [vmem:[#allocation5 + $0x728] ss:$24 sps:$4 sm:$0xff]   ;;  %v3945_v53 = vld [vmem:[#allocation5 + $0x754] ss:$24 sps:$4 sm:$0xff]  }
  0xe5   :  { %2103 = vmatprep.subr.bf16.mxu1 %v3863_v54  ;;  %v3948_v54 = vld [vmem:[#allocation5 + $0x75c] ss:$24 sps:$4 sm:$0xff]  }
  0xe7   :  { %1981 = vmatpush1.bf16.msra.mxu0 %v3858_v55  ;;  %v3943_v55 = vld [vmem:[#allocation5 + $0x750] ss:$24 sps:$4 sm:$0xff]  }
  0xe8   :  { %2104 = vmatpush1.bf16.msra.mxu1 %v3861_v56  ;;  %1982 = vmatprep.subr.bf16.mxu0 %v3866_v57  ;;  %v3946_v56 = vld [vmem:[#allocation5 + $0x758] ss:$24 sps:$4 sm:$0xff]   ;;  %v3951_v57 = vld [vmem:[#allocation5 + $0x784] ss:$24 sps:$4 sm:$0xff]  }
  0xe9   :  { %2105 = vmatprep.subr.bf16.mxu1 %v3869_v58  ;;  %v3954_v58 = vld [vmem:[#allocation5 + $0x78c] ss:$24 sps:$4 sm:$0xff]  }
  0xeb   :  { %1983 = vmatpush1.bf16.msra.mxu0 %v3864_v59  ;;  %v3949_v59 = vld [vmem:[#allocation5 + $0x780] ss:$24 sps:$4 sm:$0xff]  }
  0xec   :  { %2106 = vmatpush1.bf16.msra.mxu1 %v3867_v60  ;;  %1984 = vmatprep.subr.bf16.mxu0 %v3872_v62  ;;  %v3952_v60 = vld [vmem:[#allocation5 + $0x788] ss:$24 sps:$4 sm:$0xff]   ;;  %v3957_v62 = vld [vmem:[#allocation5 + $0x7b4] ss:$24 sps:$4 sm:$0xff]  }
  0xed   :  { %2107 = vmatprep.subr.bf16.mxu1 %v3875_v63  ;;  %v3960_v63 = vld [vmem:[#allocation5 + $0x7bc] ss:$24 sps:$4 sm:$0xff]  }
  0xef   :  { %1985 = vmatpush1.bf16.msra.mxu0 %v3870_v0  ;;  %v3955_v0 = vld [vmem:[#allocation5 + $0x7b0] ss:$24 sps:$4 sm:$0xff]  }
  0xf0   :  { %2108 = vmatpush1.bf16.msra.mxu1 %v3873_v1  ;;  %1986 = vmatprep.subr.bf16.mxu0 %v3878_v2  ;;  %v3958_v1 = vld [vmem:[#allocation5 + $0x7b8] ss:$24 sps:$4 sm:$0xff]   ;;  %v3963_v2 = vld [vmem:[#allocation5 + $0x7e4] ss:$24 sps:$4 sm:$0xff]  }
  0xf1   :  { %2109 = vmatprep.subr.bf16.mxu1 %v3881_v3  ;;  %v3966_v3 = vld [vmem:[#allocation5 + $0x7ec] ss:$24 sps:$4 sm:$0xff]  }
  0xf3   :  { %1987 = vmatpush1.bf16.msra.mxu0 %v3876_v4  ;;  %v3961_v4 = vld [vmem:[#allocation5 + $0x7e0] ss:$24 sps:$4 sm:$0xff]  }
  0xf4   :  { %2110 = vmatpush1.bf16.msra.mxu1 %v3879_v5  ;;  %1988 = vmatprep.subr.bf16.mxu0 %v3884_v6  ;;  %v3964_v5 = vld [vmem:[#allocation5 + $0x7e8] ss:$24 sps:$4 sm:$0xff]   ;;  %v3969_v6 = vld [vmem:[#allocation5 + $0x814] ss:$24 sps:$4 sm:$0xff]  }
  0xf5   :  { %2111 = vmatprep.subr.bf16.mxu1 %v3887_v7  ;;  %v3972_v7 = vld [vmem:[#allocation5 + $0x81c] ss:$24 sps:$4 sm:$0xff]  }
  0xf7   :  { %1989 = vmatpush1.bf16.msra.mxu0 %v3882_v8  ;;  %v3967_v8 = vld [vmem:[#allocation5 + $0x810] ss:$24 sps:$4 sm:$0xff]  }
  0xf8   :  { %2112 = vmatpush1.bf16.msra.mxu1 %v3885_v9  ;;  %1990 = vmatprep.subr.bf16.mxu0 %v3890_v11  ;;  %v3970_v9 = vld [vmem:[#allocation5 + $0x818] ss:$24 sps:$4 sm:$0xff]   ;;  %v3975_v11 = vld [vmem:[#allocation5 + $0x844] ss:$24 sps:$4 sm:$0xff]  }
  0xf9   :  { %2113 = vmatprep.subr.bf16.mxu1 %v3893_v12  ;;  %v3978_v12 = vld [vmem:[#allocation5 + $0x84c] ss:$24 sps:$4 sm:$0xff]  }
  0xfb   :  { %1991 = vmatpush1.bf16.msra.mxu0 %v3888_v13  ;;  %v3973_v13 = vld [vmem:[#allocation5 + $0x840] ss:$24 sps:$4 sm:$0xff]  }
  0xfc   :  { %2114 = vmatpush1.bf16.msra.mxu1 %v3891_v14  ;;  %1992 = vmatprep.subr.bf16.mxu0 %v3896_v15  ;;  %v3976_v14 = vld [vmem:[#allocation5 + $0x848] ss:$24 sps:$4 sm:$0xff]   ;;  %v3981_v15 = vld [vmem:[#allocation5 + $0x874] ss:$24 sps:$4 sm:$0xff]  }
  0xfd   :  { %2115 = vmatprep.subr.bf16.mxu1 %v3899_v16  ;;  %v3984_v16 = vld [vmem:[#allocation5 + $0x87c] ss:$24 sps:$4 sm:$0xff]  }
  0xff   :  { %1993 = vmatpush1.bf16.msra.mxu0 %v3894_v18  ;;  %v3979_v18 = vld [vmem:[#allocation5 + $0x870] ss:$24 sps:$4 sm:$0xff]  }
 0x100   :  { %2116 = vmatpush1.bf16.msra.mxu1 %v3897_v19  ;;  %2003 = vmatprep.subr.bf16.mxu0 %v3903_v20  ;;  %v3982_v19 = vld [vmem:[#allocation5 + $0x878] ss:$24 sps:$4 sm:$0xff]   ;;  %v3987_v20 = vld [vmem:[#allocation5 + $0x8a4] ss:$24 sps:$4 sm:$0xff]  }
 0x101   :  { %2126 = vmatprep.subr.bf16.mxu1 %v3906_v22  ;;  %v3990_v22 = vld [vmem:[#allocation5 + $0x8ac] ss:$24 sps:$4 sm:$0xff]  }
 0x102   :  { %1995 = vmatmul.mubr.bf16.vlgmr.msra.gmra.mrb[0].mxu0 %v4649_v25 }
 0x103   :  { %2118 = vmatmul.mubr.bf16.vlgmr.msra.gmra.mrb[0].mxu1 %v4649_v25  ;;  %2004 = vmatpush1.bf16.msra.mxu0 %v3901_v23  ;;  %v3985_v23 = vld [vmem:[#allocation5 + $0x8a0] ss:$24 sps:$4 sm:$0xff]  }
 0x104   :  { %2127 = vmatpush1.bf16.msra.mxu1 %v3904_v24  ;;  %2005 = vmatprep.subr.bf16.mxu0 %v3909_v26  ;;  %v3988_v24 = vld [vmem:[#allocation5 + $0x8a8] ss:$24 sps:$4 sm:$0xff]   ;;  %v3993_v26 = vld [vmem:[#allocation5 + $0x8d4] ss:$24 sps:$4 sm:$0xff]  }
 0x105   :  { %2128 = vmatprep.subr.bf16.mxu1 %v3912_v28  ;;  %2035 = vmatprep.mubr.bf16.mxu0 %v4657_v31  ;;  %v3996_v28 = vld [vmem:[#allocation5 + $0x8dc] ss:$24 sps:$4 sm:$0xff]  }
 0x106   :  { %2158 = vmatprep.mubr.bf16.mxu1 %v4657_v31 }
 0x107   :  { %2006 = vmatpush1.bf16.msra.mxu0 %v3907_v30  ;;  %v3994_v30 = vld [vmem:[#allocation5 + $0x8d8] ss:$24 sps:$4 sm:$0xff]  }
 0x108   :  { %2129 = vmatpush1.bf16.msra.mxu1 %v3910_v10  ;;  %2007 = vmatprep.subr.bf16.mxu0 %v3915_v32  ;;  %v3999_v10 = vld [vmem:[#allocation5 + $0x14] ss:$24 sps:$4 sm:$0xff]   ;;  %v4663_v32 = vpack.c.bf16 %v4651_v27, %v4651_v27  ;;  %v4006_v27 = vld [vmem:[#allocation5 + $0xa0] ss:$24 sps:$4 sm:$0xff]  }
 0x109   :  { %2130 = vmatprep.subr.bf16.mxu1 %v3918_v33  ;;  %v3997_v33 = vld [vmem:[#allocation5 + $0x10] ss:$24 sps:$4 sm:$0xff]  }
 0x10b   :  { %2008 = vmatpush1.bf16.msra.mxu0 %v3913_v34  ;;  %v4002_v34 = vld [vmem:[#allocation5 + $0x44] ss:$24 sps:$4 sm:$0xff]  }
 0x10c   :  { %2131 = vmatpush1.bf16.msra.mxu1 %v3916_v35  ;;  %2009 = vmatprep.subr.bf16.mxu0 %v3921_v36  ;;  %v4000_v35 = vld [vmem:[#allocation5 + $0x40] ss:$24 sps:$4 sm:$0xff]   ;;  %v4005_v36 = vld [vmem:[#allocation5 + $0x74] ss:$24 sps:$4 sm:$0xff]  }
 0x10d   :  { %2132 = vmatprep.subr.bf16.mxu1 %v3924_v37  ;;  %v4003_v37 = vld [vmem:[#allocation5 + $0x70] ss:$24 sps:$4 sm:$0xff]  }
 0x10f   :  { %2010 = vmatpush1.bf16.msra.mxu0 %v3919_v38  ;;  %v4008_v38 = vld [vmem:[#allocation5 + $0xa4] ss:$24 sps:$4 sm:$0xff]  }
 0x110   :  { %2133 = vmatpush1.bf16.msra.mxu1 %v3922_v39  ;;  %2011 = vmatprep.subr.bf16.mxu0 %v3927_v40  ;;  %v4011_v39 = vld [vmem:[#allocation5 + $0xd4] ss:$24 sps:$4 sm:$0xff]   ;;  %v4009_v40 = vld [vmem:[#allocation5 + $0xd0] ss:$24 sps:$4 sm:$0xff]  }
 0x111   :  { %2134 = vmatprep.subr.bf16.mxu1 %v3930_v41  ;;  %v4014_v41 = vld [vmem:[#allocation5 + $0x104] ss:$24 sps:$4 sm:$0xff]  }
 0x113   :  { %2012 = vmatpush1.bf16.msra.mxu0 %v3925_v42  ;;  %v4012_v42 = vld [vmem:[#allocation5 + $0x100] ss:$24 sps:$4 sm:$0xff]  }
 0x114   :  { %2135 = vmatpush1.bf16.msra.mxu1 %v3928_v43  ;;  %2013 = vmatprep.subr.bf16.mxu0 %v3933_v45  ;;  %v4017_v43 = vld [vmem:[#allocation5 + $0x134] ss:$24 sps:$4 sm:$0xff]   ;;  %v4015_v45 = vld [vmem:[#allocation5 + $0x130] ss:$24 sps:$4 sm:$0xff]  }
 0x115   :  { %2136 = vmatprep.subr.bf16.mxu1 %v3936_v46  ;;  %v4018_v46 = vld [vmem:[#allocation5 + $0x160] ss:$24 sps:$4 sm:$0xff]  }
 0x117   :  { %2014 = vmatpush1.bf16.msra.mxu0 %v3931_v47  ;;  %v4023_v47 = vld [vmem:[#allocation5 + $0x194] ss:$24 sps:$4 sm:$0xff]  }
 0x118   :  { %2137 = vmatpush1.bf16.msra.mxu1 %v3934_v48  ;;  %2015 = vmatprep.subr.bf16.mxu0 %v3939_v49  ;;  %v4021_v48 = vld [vmem:[#allocation5 + $0x190] ss:$24 sps:$4 sm:$0xff]   ;;  %v4026_v49 = vld [vmem:[#allocation5 + $0x1c4] ss:$24 sps:$4 sm:$0xff]  }
 0x119   :  { %2138 = vmatprep.subr.bf16.mxu1 %v3942_v50  ;;  %v4024_v50 = vld [vmem:[#allocation5 + $0x1c0] ss:$24 sps:$4 sm:$0xff]  }
 0x11b   :  { %2016 = vmatpush1.bf16.msra.mxu0 %v3937_v51  ;;  %v4029_v51 = vld [vmem:[#allocation5 + $0x1f4] ss:$24 sps:$4 sm:$0xff]  }
 0x11c   :  { %2139 = vmatpush1.bf16.msra.mxu1 %v3940_v52  ;;  %2017 = vmatprep.subr.bf16.mxu0 %v3945_v53  ;;  %v4123_v52 = vld [vmem:[#allocation8] ss:$8 sps:$4 sm:$0xff]   ;;  %v4125_v53 = vld [vmem:[#allocation8 + $0x4] ss:$8 sps:$4 sm:$0xff]  }
 0x11d   :  { %2140 = vmatprep.subr.bf16.mxu1 %v3948_v54  ;;  %v4027_v54 = vld [vmem:[#allocation5 + $0x1f0] ss:$24 sps:$4 sm:$0xff]  }
 0x11f   :  { %2018 = vmatpush1.bf16.msra.mxu0 %v3943_v55  ;;  %v4032_v55 = vld [vmem:[#allocation5 + $0x224] ss:$24 sps:$4 sm:$0xff]  }
 0x120   :  { %2141 = vmatpush1.bf16.msra.mxu1 %v3946_v56  ;;  %2019 = vmatprep.subr.bf16.mxu0 %v3951_v57  ;;  %v4129_v56 = vld [vmem:[#allocation8 + $0x10] ss:$8 sps:$4 sm:$0xff]   ;;  %v4131_v57 = vld [vmem:[#allocation8 + $0x14] ss:$8 sps:$4 sm:$0xff]  }
 0x121   :  { %2142 = vmatprep.subr.bf16.mxu1 %v3954_v58  ;;  %v4030_v58 = vld [vmem:[#allocation5 + $0x220] ss:$24 sps:$4 sm:$0xff]  }
 0x123   :  { %2020 = vmatpush1.bf16.msra.mxu0 %v3949_v59  ;;  %v4035_v59 = vld [vmem:[#allocation5 + $0x254] ss:$24 sps:$4 sm:$0xff]  }
 0x124   :  { %2143 = vmatpush1.bf16.msra.mxu1 %v3952_v60  ;;  %2021 = vmatprep.subr.bf16.mxu0 %v3957_v62  ;;  %v4135_v60 = vld [vmem:[#allocation8 + $0x20] ss:$8 sps:$4 sm:$0xff]   ;;  %v4137_v62 = vld [vmem:[#allocation8 + $0x24] ss:$8 sps:$4 sm:$0xff]  }
 0x125   :  { %2144 = vmatprep.subr.bf16.mxu1 %v3960_v63  ;;  %v4033_v63 = vld [vmem:[#allocation5 + $0x250] ss:$24 sps:$4 sm:$0xff]  }
 0x127   :  { %2022 = vmatpush1.bf16.msra.mxu0 %v3955_v0  ;;  %v4038_v0 = vld [vmem:[#allocation5 + $0x284] ss:$24 sps:$4 sm:$0xff]  }
 0x128   :  { %2145 = vmatpush1.bf16.msra.mxu1 %v3958_v1  ;;  %2023 = vmatprep.subr.bf16.mxu0 %v3963_v2  ;;  %v4141_v1 = vld [vmem:[#allocation8 + $0x30] ss:$8 sps:$4 sm:$0xff]   ;;  %v4143_v2 = vld [vmem:[#allocation8 + $0x34] ss:$8 sps:$4 sm:$0xff]  }
 0x129   :  { %2146 = vmatprep.subr.bf16.mxu1 %v3966_v3  ;;  %v4036_v3 = vld [vmem:[#allocation5 + $0x280] ss:$24 sps:$4 sm:$0xff]  }
 0x12b   :  { %2024 = vmatpush1.bf16.msra.mxu0 %v3961_v4  ;;  %v4041_v4 = vld [vmem:[#allocation5 + $0x2b4] ss:$24 sps:$4 sm:$0xff]  }
 0x12c   :  { %2147 = vmatpush1.bf16.msra.mxu1 %v3964_v5  ;;  %2025 = vmatprep.subr.bf16.mxu0 %v3969_v6  ;;  %v4147_v5 = vld [vmem:[#allocation8 + $0x40] ss:$8 sps:$4 sm:$0xff]   ;;  %v4149_v6 = vld [vmem:[#allocation8 + $0x44] ss:$8 sps:$4 sm:$0xff]  }
 0x12d   :  { %2148 = vmatprep.subr.bf16.mxu1 %v3972_v7  ;;  %v4039_v7 = vld [vmem:[#allocation5 + $0x2b0] ss:$24 sps:$4 sm:$0xff]  }
 0x12f   :  { %2026 = vmatpush1.bf16.msra.mxu0 %v3967_v8  ;;  %v4044_v8 = vld [vmem:[#allocation5 + $0x2e4] ss:$24 sps:$4 sm:$0xff]  }
 0x130   :  { %2149 = vmatpush1.bf16.msra.mxu1 %v3970_v9  ;;  %2027 = vmatprep.subr.bf16.mxu0 %v3975_v11  ;;  %v4153_v9 = vld [vmem:[#allocation8 + $0x50] ss:$8 sps:$4 sm:$0xff]   ;;  %v4155_v11 = vld [vmem:[#allocation8 + $0x54] ss:$8 sps:$4 sm:$0xff]  }
 0x131   :  { %2150 = vmatprep.subr.bf16.mxu1 %v3978_v12  ;;  %v4042_v12 = vld [vmem:[#allocation5 + $0x2e0] ss:$24 sps:$4 sm:$0xff]  }
 0x133   :  { %2028 = vmatpush1.bf16.msra.mxu0 %v3973_v13  ;;  %v4047_v13 = vld [vmem:[#allocation5 + $0x314] ss:$24 sps:$4 sm:$0xff]  }
 0x134   :  { %2151 = vmatpush1.bf16.msra.mxu1 %v3976_v14  ;;  %2029 = vmatprep.subr.bf16.mxu0 %v3981_v15  ;;  %v4159_v14 = vld [vmem:[#allocation8 + $0x60] ss:$8 sps:$4 sm:$0xff]   ;;  %v4161_v15 = vld [vmem:[#allocation8 + $0x64] ss:$8 sps:$4 sm:$0xff]  }
 0x135   :  { %2152 = vmatprep.subr.bf16.mxu1 %v3984_v16  ;;  %v4045_v16 = vld [vmem:[#allocation5 + $0x310] ss:$24 sps:$4 sm:$0xff]  }
 0x137   :  { %2030 = vmatpush1.bf16.msra.mxu0 %v3979_v18  ;;  %v4050_v18 = vld [vmem:[#allocation5 + $0x344] ss:$24 sps:$4 sm:$0xff]  }
 0x138   :  { %2153 = vmatpush1.bf16.msra.mxu1 %v3982_v19  ;;  %2031 = vmatprep.subr.bf16.mxu0 %v3987_v20  ;;  %v4164_v19 = vld [vmem:[#allocation8 + $0x74] ss:$8 sps:$4 sm:$0xff]   ;;  %v4162_v20 = vld [vmem:[#allocation8 + $0x70] ss:$8 sps:$4 sm:$0xff]  }
 0x139   :  { %2154 = vmatprep.subr.bf16.mxu1 %v3990_v22  ;;  %v4167_v22 = vld [vmem:[#allocation8 + $0x84] ss:$8 sps:$4 sm:$0xff]  }
 0x13b   :  { %2032 = vmatpush1.bf16.msra.mxu0 %v3985_v23  ;;  %v4048_v23 = vld [vmem:[#allocation5 + $0x340] ss:$24 sps:$4 sm:$0xff]  }
 0x13c   :  { %2155 = vmatpush1.bf16.msra.mxu1 %v3988_v24  ;;  %2033 = vmatprep.subr.bf16.mxu0 %v3993_v26  ;;  %v4053_v24 = vld [vmem:[#allocation5 + $0x374] ss:$24 sps:$4 sm:$0xff]  }
 0x13d   :  { %2156 = vmatprep.subr.bf16.mxu1 %v3996_v28  ;;  %v4165_v26 = vld [vmem:[#allocation8 + $0x80] ss:$8 sps:$4 sm:$0xff]   ;;  %v4170_v28 = vld [vmem:[#allocation8 + $0x94] ss:$8 sps:$4 sm:$0xff]  }
 0x13f   :  { %2034 = vmatpush1.bf16.msra.mxu0 %v3991_v29  ;;  %v4051_v29 = vld [vmem:[#allocation5 + $0x370] ss:$24 sps:$4 sm:$0xff]  }
 0x140   :  { %2157 = vmatpush1.bf16.msra.mxu1 %v3994_v30  ;;  %2167 = vmatprep.subr.bf16.mxu0 %v3999_v10  ;;  %v4056_v30 = vld [vmem:[#allocation5 + $0x3a4] ss:$24 sps:$4 sm:$0xff]  }
 0x141   :  { %2890 = vmatprep.subr.bf16.mxu1 %v4125_v53  ;;  %v4168_v10 = vld [vmem:[#allocation8 + $0x90] ss:$8 sps:$4 sm:$0xff]  }
 0x142   :  { %2036 = vmatmul.mubr.bf16.vlgmr.msra.gmra.mrb[0].mxu0 %v4663_v32  ;;  %v4186_v53 = vld [vmem:[#allocation8 + $0xf0] ss:$8 sps:$4 sm:$0xff]  }
 0x143   :  { %2159 = vmatmul.mubr.bf16.vlgmr.msra.gmra.mrb[0].mxu1 %v4663_v32  ;;  %2168 = vmatpush1.bf16.msra.mxu0 %v3997_v33  ;;  %v4054_v33 = vld [vmem:[#allocation5 + $0x3a0] ss:$24 sps:$4 sm:$0xff]  }
 0x144   :  { %2199 = vmatprep.mubr.bf16.mxu0 %v4631_v61  ;;  %2169 = vmatprep.subr.bf16.mxu0 %v4002_v34  ;;  %v4020_v61 = vld [vmem:[#allocation5 + $0x164] ss:$24 sps:$4 sm:$0xff]   ;;  %v4059_v34 = vld [vmem:[#allocation5 + $0x3d4] ss:$24 sps:$4 sm:$0xff]  }
 0x145   :  { %2891 = vmatpush1.bf16.msra.mxu1 %v4123_v52  ;;  %v4188_v52 = vld [vmem:[#allocation8 + $0xf4] ss:$8 sps:$4 sm:$0xff]  }
 0x146   :  { %2892 = vmatprep.subr.bf16.mxu1 %v4131_v57  ;;  %v4075_v57 = vld [vmem:[#allocation5 + $0x4f0] ss:$24 sps:$4 sm:$0xff]  }
 0x147   :  { %2170 = vmatpush1.bf16.msra.mxu0 %v4000_v35  ;;  %v4176_v35 = vld [vmem:[#allocation8 + $0xb4] ss:$8 sps:$4 sm:$0xff]  }
 0x148   :  { %2171 = vmatprep.subr.bf16.mxu0 %v4005_v36  ;;  %v4057_v36 = vld [vmem:[#allocation5 + $0x3d0] ss:$24 sps:$4 sm:$0xff]  }
 0x149   :  { %2893 = vmatpush1.bf16.msra.mxu1 %v4129_v56  ;;  %v4191_v56 = vld [vmem:[#allocation8 + $0x104] ss:$8 sps:$4 sm:$0xff]  }
 0x14a   :  { %2894 = vmatprep.subr.bf16.mxu1 %v4137_v62  ;;  %v4081_v62 = vld [vmem:[#allocation5 + $0x550] ss:$24 sps:$4 sm:$0xff]  }
 0x14b   :  { %2172 = vmatpush1.bf16.msra.mxu0 %v4003_v37  ;;  %v4062_v37 = vld [vmem:[#allocation5 + $0x404] ss:$24 sps:$4 sm:$0xff]  }
 0x14c   :  { %2173 = vmatprep.subr.bf16.mxu0 %v4008_v38  ;;  %v4174_v38 = vld [vmem:[#allocation8 + $0xb0] ss:$8 sps:$4 sm:$0xff]  }
 0x14d   :  { %2895 = vmatpush1.bf16.msra.mxu1 %v4135_v60  ;;  %v4083_v60 = vld [vmem:[#allocation5 + $0x554] ss:$24 sps:$4 sm:$0xff]  }
 0x14e   :  { %2896 = vmatprep.subr.bf16.mxu1 %v4143_v2  ;;  %v4087_v2 = vld [vmem:[#allocation5 + $0x5b0] ss:$24 sps:$4 sm:$0xff]  }
 0x14f   :  { %2174 = vmatpush1.bf16.msra.mxu0 %v4006_v27  ;;  %v4060_v27 = vld [vmem:[#allocation5 + $0x400] ss:$24 sps:$4 sm:$0xff]  }
 0x150   :  { %2175 = vmatprep.subr.bf16.mxu0 %v4011_v39  ;;  %v4065_v39 = vld [vmem:[#allocation5 + $0x434] ss:$24 sps:$4 sm:$0xff]  }
 0x151   :  { %2897 = vmatpush1.bf16.msra.mxu1 %v4141_v1  ;;  %v4089_v1 = vld [vmem:[#allocation5 + $0x5b4] ss:$24 sps:$4 sm:$0xff]  }
 0x152   :  { %2898 = vmatprep.subr.bf16.mxu1 %v4149_v6  ;;  %v4093_v6 = vld [vmem:[#allocation5 + $0x610] ss:$24 sps:$4 sm:$0xff]  }
 0x153   :  { %2176 = vmatpush1.bf16.msra.mxu0 %v4009_v40  ;;  %v4179_v40 = vld [vmem:[#allocation8 + $0xc4] ss:$8 sps:$4 sm:$0xff]  }
 0x154   :  { %2177 = vmatprep.subr.bf16.mxu0 %v4014_v41  ;;  %v4177_v41 = vld [vmem:[#allocation8 + $0xc0] ss:$8 sps:$4 sm:$0xff]  }
 0x155   :  { %2899 = vmatpush1.bf16.msra.mxu1 %v4147_v5  ;;  %v4095_v5 = vld [vmem:[#allocation5 + $0x614] ss:$24 sps:$4 sm:$0xff]  }
 0x156   :  { %2900 = vmatprep.subr.bf16.mxu1 %v4155_v11  ;;  %v4099_v11 = vld [vmem:[#allocation5 + $0x670] ss:$24 sps:$4 sm:$0xff]  }
 0x157   :  { %2178 = vmatpush1.bf16.msra.mxu0 %v4012_v42  ;;  %v4063_v42 = vld [vmem:[#allocation5 + $0x430] ss:$24 sps:$4 sm:$0xff]  }
 0x158   :  { %2179 = vmatprep.subr.bf16.mxu0 %v4017_v43  ;;  %v4068_v43 = vld [vmem:[#allocation5 + $0x464] ss:$24 sps:$4 sm:$0xff]  }
 0x159   :  { %2901 = vmatpush1.bf16.msra.mxu1 %v4153_v9  ;;  %v4101_v9 = vld [vmem:[#allocation5 + $0x674] ss:$24 sps:$4 sm:$0xff]  }
 0x15a   :  { %2902 = vmatprep.subr.bf16.mxu1 %v4161_v15  ;;  %v4105_v15 = vld [vmem:[#allocation5 + $0x6d0] ss:$24 sps:$4 sm:$0xff]  }
 0x15b   :  { %2180 = vmatpush1.bf16.msra.mxu0 %v4015_v45  ;;  %v4182_v45 = vld [vmem:[#allocation8 + $0xd4] ss:$8 sps:$4 sm:$0xff]  }
 0x15c   :  { %2181 = vmatprep.subr.bf16.mxu0 %v4020_v61  ;;  %v4180_v61 = vld [vmem:[#allocation8 + $0xd0] ss:$8 sps:$4 sm:$0xff]  }
 0x15d   :  { %2903 = vmatpush1.bf16.msra.mxu1 %v4159_v14  ;;  %v4107_v14 = vld [vmem:[#allocation5 + $0x6d4] ss:$24 sps:$4 sm:$0xff]  }
 0x15e   :  { %2904 = vmatprep.subr.bf16.mxu1 %v4164_v19  ;;  %v4116_v19 = vld [vmem:[#allocation5 + $0x764] ss:$24 sps:$4 sm:$0xff]  }
 0x15f   :  { %2182 = vmatpush1.bf16.msra.mxu0 %v4018_v46  ;;  %v4066_v46 = vld [vmem:[#allocation5 + $0x460] ss:$24 sps:$4 sm:$0xff]  }
 0x160   :  { %2183 = vmatprep.subr.bf16.mxu0 %v4023_v47  ;;  %v4071_v47 = vld [vmem:[#allocation5 + $0x494] ss:$24 sps:$4 sm:$0xff]  }
 0x161   :  { %2905 = vmatpush1.bf16.msra.mxu1 %v4162_v20  ;;  %v4114_v20 = vld [vmem:[#allocation5 + $0x760] ss:$24 sps:$4 sm:$0xff]  }
 0x162   :  { %2906 = vmatprep.subr.bf16.mxu1 %v4167_v22  ;;  %v4119_v22 = vld [vmem:[#allocation5 + $0x794] ss:$24 sps:$4 sm:$0xff]  }
 0x163   :  { %2184 = vmatpush1.bf16.msra.mxu0 %v4021_v48  ;;  %v4185_v48 = vld [vmem:[#allocation8 + $0xe4] ss:$8 sps:$4 sm:$0xff]  }
 0x164   :  { %2185 = vmatprep.subr.bf16.mxu0 %v4026_v49  ;;  %v4183_v49 = vld [vmem:[#allocation8 + $0xe0] ss:$8 sps:$4 sm:$0xff]  }
 0x165   :  { %2907 = vmatpush1.bf16.msra.mxu1 %v4165_v26  ;;  %v4120_v26 = vld [vmem:[#allocation5 + $0x7c0] ss:$24 sps:$4 sm:$0xff]  }
 0x166   :  { %2908 = vmatprep.subr.bf16.mxu1 %v4170_v28  ;;  %v4128_v28 = vld [vmem:[#allocation5 + $0x7f4] ss:$24 sps:$4 sm:$0xff]  }
 0x167   :  { %2186 = vmatpush1.bf16.msra.mxu0 %v4024_v50  ;;  %v4069_v50 = vld [vmem:[#allocation5 + $0x490] ss:$24 sps:$4 sm:$0xff]  }
 0x168   :  { %2187 = vmatprep.subr.bf16.mxu0 %v4029_v51  ;;  %v4074_v51 = vld [vmem:[#allocation5 + $0x4c4] ss:$24 sps:$4 sm:$0xff]  }
 0x169   :  { %2909 = vmatpush1.bf16.msra.mxu1 %v4168_v10  ;;  %v4132_v10 = vld [vmem:[#allocation5 + $0x820] ss:$24 sps:$4 sm:$0xff]  }
 0x16b   :  { %2188 = vmatpush1.bf16.msra.mxu0 %v4027_v54  ;;  %v4072_v54 = vld [vmem:[#allocation5 + $0x4c0] ss:$24 sps:$4 sm:$0xff]  }
 0x16c   :  { %2189 = vmatprep.subr.bf16.mxu0 %v4032_v55  ;;  %v4077_v55 = vld [vmem:[#allocation5 + $0x4f4] ss:$24 sps:$4 sm:$0xff]  }
 0x16f   :  { %2190 = vmatpush1.bf16.msra.mxu0 %v4030_v58  ;;  %v4080_v58 = vld [vmem:[#allocation5 + $0x524] ss:$24 sps:$4 sm:$0xff]  }
 0x170   :  { %2191 = vmatprep.subr.bf16.mxu0 %v4035_v59  ;;  %v4078_v59 = vld [vmem:[#allocation5 + $0x520] ss:$24 sps:$4 sm:$0xff]  }
 0x173   :  { %2192 = vmatpush1.bf16.msra.mxu0 %v4033_v63  ;;  %v4086_v63 = vld [vmem:[#allocation5 + $0x584] ss:$24 sps:$4 sm:$0xff]  }
 0x174   :  { %2193 = vmatprep.subr.bf16.mxu0 %v4038_v0  ;;  %v4084_v0 = vld [vmem:[#allocation5 + $0x580] ss:$24 sps:$4 sm:$0xff]  }
 0x177   :  { %2194 = vmatpush1.bf16.msra.mxu0 %v4036_v3  ;;  %v4092_v3 = vld [vmem:[#allocation5 + $0x5e4] ss:$24 sps:$4 sm:$0xff]  }
 0x178   :  { %2195 = vmatprep.subr.bf16.mxu0 %v4041_v4  ;;  %v4090_v4 = vld [vmem:[#allocation5 + $0x5e0] ss:$24 sps:$4 sm:$0xff]  }
 0x17b   :  { %2196 = vmatpush1.bf16.msra.mxu0 %v4039_v7  ;;  %v4098_v7 = vld [vmem:[#allocation5 + $0x644] ss:$24 sps:$4 sm:$0xff]  }
 0x17c   :  { %2197 = vmatprep.subr.bf16.mxu0 %v4044_v8  ;;  %v4096_v8 = vld [vmem:[#allocation5 + $0x640] ss:$24 sps:$4 sm:$0xff]  }
 0x17f   :  { %2198 = vmatpush1.bf16.msra.mxu0 %v4042_v12  ;;  %v4104_v12 = vld [vmem:[#allocation5 + $0x6a4] ss:$24 sps:$4 sm:$0xff]  }
 0x180   :  { %2208 = vmatprep.subr.bf16.mxu0 %v4047_v13  ;;  %v4102_v13 = vld [vmem:[#allocation5 + $0x6a0] ss:$24 sps:$4 sm:$0xff]  }
 0x182   :  { %2200 = vmatmul.mubr.bf16.vlgmr.msra.gmra.mrb[4].mxu0 %v4639_v17  ;;  %v4173_v17 = vld [vmem:[#allocation8 + $0xa4] ss:$8 sps:$4 sm:$0xff]  }
 0x183   :  { %2209 = vmatpush1.bf16.msra.mxu0 %v4045_v16  ;;  %2240 = vmatprep.mubr.bf16.mxu0 %v4641_v21  ;;  %v4171_v21 = vld [vmem:[#allocation8 + $0xa0] ss:$8 sps:$4 sm:$0xff]  }
 0x184   :  { %2210 = vmatprep.subr.bf16.mxu0 %v4050_v18  ;;  %2910 = vmatprep.subr.bf16.mxu1 %v4173_v17  ;;  %v4110_v16 = vld [vmem:[#allocation5 + $0x704] ss:$24 sps:$4 sm:$0xff]   ;;  %v4113_v18 = vld [vmem:[#allocation5 + $0x734] ss:$24 sps:$4 sm:$0xff]  }
 0x185   :  { %2911 = vmatpush1.bf16.msra.mxu1 %v4171_v21  ;;  %v4140_v17 = vld [vmem:[#allocation5 + $0x854] ss:$24 sps:$4 sm:$0xff]   ;;  %v4144_v21 = vld [vmem:[#allocation5 + $0x880] ss:$24 sps:$4 sm:$0xff]  }
 0x186   :  { %2912 = vmatprep.subr.bf16.mxu1 %v4176_v35  ;;  %v4152_v35 = vld [vmem:[#allocation5 + $0x8b4] ss:$24 sps:$4 sm:$0xff]  }
 0x187   :  { %2211 = vmatpush1.bf16.msra.mxu0 %v4048_v23  ;;  %v4117_v23 = vld [vmem:[#allocation5 + $0x790] ss:$24 sps:$4 sm:$0xff]  }
 0x188   :  { %2212 = vmatprep.subr.bf16.mxu0 %v4053_v24  ;;  %v4122_v24 = vld [vmem:[#allocation5 + $0x7c4] ss:$24 sps:$4 sm:$0xff]  }
 0x189   :  { %2913 = vmatpush1.bf16.msra.mxu1 %v4174_v38  ;;  %v4156_v38 = vld [vmem:[#allocation5 + $0x8e0] ss:$24 sps:$4 sm:$0xff]  }
 0x18a   :  { %2914 = vmatprep.subr.bf16.mxu1 %v4179_v40  ;;  %v457_v40 = vsub.s32 1, %v4628_v44 }
 0x18b   :  { %2213 = vmatpush1.bf16.msra.mxu0 %v4051_v29  ;;  %v4126_v29 = vld [vmem:[#allocation5 + $0x7f0] ss:$24 sps:$4 sm:$0xff]  }
 0x18c   :  { %2214 = vmatprep.subr.bf16.mxu0 %v4056_v30  ;;  %v4134_v30 = vld [vmem:[#allocation5 + $0x824] ss:$24 sps:$4 sm:$0xff]  }
 0x18d   :  { %2915 = vmatpush1.bf16.msra.mxu1 %v4177_v41  ;;  %v465_v41 = vsub.s32 3, %v4628_v44 }
 0x18e   :  { %2916 = vmatprep.subr.bf16.mxu1 %v4182_v45 }
 0x18f   :  { %2215 = vmatpush1.bf16.msra.mxu0 %v4054_v33  ;;  %v4138_v33 = vld [vmem:[#allocation5 + $0x850] ss:$24 sps:$4 sm:$0xff]  }
 0x190   :  { %2216 = vmatprep.subr.bf16.mxu0 %v4059_v34  ;;  %v4146_v34 = vld [vmem:[#allocation5 + $0x884] ss:$24 sps:$4 sm:$0xff]  }
 0x191   :  { %2917 = vmatpush1.bf16.msra.mxu1 %v4180_v61 }
 0x192   :  { %2918 = vmatprep.subr.bf16.mxu1 %v4185_v48 }
 0x193   :  { %2217 = vmatpush1.bf16.msra.mxu0 %v4057_v36  ;;  %v4150_v36 = vld [vmem:[#allocation5 + $0x8b0] ss:$24 sps:$4 sm:$0xff]  }
 0x194   :  { %2218 = vmatprep.subr.bf16.mxu0 %v4062_v37  ;;  %v4158_v37 = vld [vmem:[#allocation5 + $0x8e4] ss:$24 sps:$4 sm:$0xff]  }
 0x195   :  { %2919 = vmatpush1.bf16.msra.mxu1 %v4183_v49 }
 0x196   :  { %2920 = vmatprep.subr.bf16.mxu1 %v4188_v52 }
 0x197   :  { %2219 = vmatpush1.bf16.msra.mxu0 %v4060_v27  ;;  %v453_v27 = vsub.s32 0, %v4628_v44 }
 0x198   :  { %2220 = vmatprep.subr.bf16.mxu0 %v4065_v39  ;;  %v4674_v39 = vld [vmem:[#allocation7] sm:$0x3f] }
 0x199   :  { %2921 = vmatpush1.bf16.msra.mxu1 %v4186_v53  ;;  %v466_v45 = vrot.slane %v4674_v39, %v465_v41  ;;  %v4285_v41 = vld [vmem:[%s4754_s5 + $0x40] sm:$0xff]  }
 0x19a   :  { %2931 = vmatprep.subr.bf16.mxu1 %v4191_v56 }
 0x19b   :  { %2221 = vmatpush1.bf16.msra.mxu0 %v4063_v42  ;;  %v454_v42 = vrot.slane %v4674_v39, %v453_v27 }
 0x19c   :  { %2222 = vmatprep.subr.bf16.mxu0 %v4068_v43  ;;  %v458_v43 = vrot.slane %v4674_v39, %v457_v40 }
 0x19f   :  { %2223 = vmatpush1.bf16.msra.mxu0 %v4066_v46 }
 0x1a0   :  { %2224 = vmatprep.subr.bf16.mxu0 %v4071_v47 }
 0x1a3   :  { %2225 = vmatpush1.bf16.msra.mxu0 %v4069_v50 }
 0x1a4   :  { %2226 = vmatprep.subr.bf16.mxu0 %v4074_v51 }
 0x1a7   :  { %2227 = vmatpush1.bf16.msra.mxu0 %v4072_v54 }
 0x1a8   :  { %2228 = vmatprep.subr.bf16.mxu0 %v4077_v55 }
 0x1ab   :  { %2229 = vmatpush1.bf16.msra.mxu0 %v4075_v57 }
 0x1ac   :  { %2230 = vmatprep.subr.bf16.mxu0 %v4080_v58 }
 0x1af   :  { %2231 = vmatpush1.bf16.msra.mxu0 %v4078_v59  ;;  %v4189_v59 = vld [vmem:[#allocation8 + $0x100] ss:$8 sps:$4 sm:$0xff]  }
 0x1b0   :  { %2232 = vmatprep.subr.bf16.mxu0 %v4083_v60 }
 0x1b3   :  { %2233 = vmatpush1.bf16.msra.mxu0 %v4081_v62 }
 0x1b4   :  { %2234 = vmatprep.subr.bf16.mxu0 %v4086_v63  ;;  %v4194_v63 = vld [vmem:[#allocation8 + $0x114] ss:$8 sps:$4 sm:$0xff]  }
 0x1b7   :  { %2235 = vmatpush1.bf16.msra.mxu0 %v4084_v0  ;;  %v4192_v0 = vld [vmem:[#allocation8 + $0x110] ss:$8 sps:$4 sm:$0xff]  }
 0x1b8   :  { %2236 = vmatprep.subr.bf16.mxu0 %v4089_v1  ;;  %v4197_v1 = vld [vmem:[#allocation8 + $0x124] ss:$8 sps:$4 sm:$0xff]  }
 0x1bb   :  { %2237 = vmatpush1.bf16.msra.mxu0 %v4087_v2  ;;  %v4195_v2 = vld [vmem:[#allocation8 + $0x120] ss:$8 sps:$4 sm:$0xff]  }
 0x1bc   :  { %2238 = vmatprep.subr.bf16.mxu0 %v4092_v3  ;;  %v4200_v3 = vld [vmem:[#allocation8 + $0x134] ss:$8 sps:$4 sm:$0xff]  }
 0x1bf   :  { %2239 = vmatpush1.bf16.msra.mxu0 %v4090_v4  ;;  %v4198_v4 = vld [vmem:[#allocation8 + $0x130] ss:$8 sps:$4 sm:$0xff]  }
 0x1c0   :  { %2249 = vmatprep.subr.bf16.mxu0 %v4095_v5  ;;  %v4203_v5 = vld [vmem:[#allocation8 + $0x144] ss:$8 sps:$4 sm:$0xff]  }
 0x1c2   :  { %2241 = vmatmul.mubr.bf16.vlgmr.msra.gmra.mrb[4].mxu0 %v4649_v25  ;;  %v4108_v25 = vld [vmem:[#allocation5 + $0x700] ss:$24 sps:$4 sm:$0xff]  }
 0x1c3   :  { %2250 = vmatpush1.bf16.msra.mxu0 %v4093_v6  ;;  %2281 = vmatprep.mubr.bf16.mxu0 %v4657_v31  ;;  %v4111_v31 = vld [vmem:[#allocation5 + $0x730] ss:$24 sps:$4 sm:$0xff]  }
 0x1c4   :  { %2251 = vmatprep.subr.bf16.mxu0 %v4098_v7  ;;  %v4201_v6 = vld [vmem:[#allocation8 + $0x140] ss:$8 sps:$4 sm:$0xff]   ;;  %v4206_v7 = vld [vmem:[#allocation8 + $0x154] ss:$8 sps:$4 sm:$0xff]  }
 0x1c7   :  { %2252 = vmatpush1.bf16.msra.mxu0 %v4096_v8  ;;  %v4204_v8 = vld [vmem:[#allocation8 + $0x150] ss:$8 sps:$4 sm:$0xff]  }
 0x1c8   :  { %2253 = vmatprep.subr.bf16.mxu0 %v4101_v9  ;;  %v4209_v9 = vld [vmem:[#allocation8 + $0x164] ss:$8 sps:$4 sm:$0xff]  }
 0x1cb   :  { %2254 = vmatpush1.bf16.msra.mxu0 %v4099_v11  ;;  %v4207_v11 = vld [vmem:[#allocation8 + $0x160] ss:$8 sps:$4 sm:$0xff]  }
 0x1cc   :  { %2255 = vmatprep.subr.bf16.mxu0 %v4104_v12  ;;  %v4212_v12 = vld [vmem:[#allocation8 + $0x174] ss:$8 sps:$4 sm:$0xff]  }
 0x1cf   :  { %2256 = vmatpush1.bf16.msra.mxu0 %v4102_v13  ;;  %v4210_v13 = vld [vmem:[#allocation8 + $0x170] ss:$8 sps:$4 sm:$0xff]  }
 0x1d0   :  { %2257 = vmatprep.subr.bf16.mxu0 %v4107_v14  ;;  %v4215_v14 = vld [vmem:[#allocation8 + $0x184] ss:$8 sps:$4 sm:$0xff]  }
 0x1d3   :  { %2258 = vmatpush1.bf16.msra.mxu0 %v4105_v15  ;;  %v4213_v15 = vld [vmem:[#allocation8 + $0x180] ss:$8 sps:$4 sm:$0xff]  }
 0x1d4   :  { %2259 = vmatprep.subr.bf16.mxu0 %v4110_v16  ;;  %v4218_v16 = vld [vmem:[#allocation8 + $0x194] ss:$8 sps:$4 sm:$0xff]  }
 0x1d7   :  { %2260 = vmatpush1.bf16.msra.mxu0 %v4108_v25  ;;  %v4216_v25 = vld [vmem:[#allocation8 + $0x190] ss:$8 sps:$4 sm:$0xff]  }
 0x1d8   :  { %2261 = vmatprep.subr.bf16.mxu0 %v4113_v18  ;;  %v4221_v18 = vld [vmem:[#allocation8 + $0x1a4] ss:$8 sps:$4 sm:$0xff]  }
 0x1db   :  { %2262 = vmatpush1.bf16.msra.mxu0 %v4111_v31  ;;  %v461_v31 = vsub.s32 2, %v4628_v44 }
 0x1dc   :  { %2263 = vmatprep.subr.bf16.mxu0 %v4116_v19  ;;  %v4219_v19 = vld [vmem:[#allocation8 + $0x1a0] ss:$8 sps:$4 sm:$0xff]  }
 0x1df   :  { %2264 = vmatpush1.bf16.msra.mxu0 %v4114_v20  ;;  %v4224_v20 = vld [vmem:[#allocation8 + $0x1b4] ss:$8 sps:$4 sm:$0xff]  }
 0x1e0   :  { %2265 = vmatprep.subr.bf16.mxu0 %v4119_v22  ;;  %v462_v22 = vrot.slane %v4674_v39, %v461_v31  ;;  %v469_v31 = vsub.s32 4, %v4628_v44 }
 0x1e3   :  { %2266 = vmatpush1.bf16.msra.mxu0 %v4117_v23  ;;  %v4222_v23 = vld [vmem:[#allocation8 + $0x1b0] ss:$8 sps:$4 sm:$0xff]  }
 0x1e4   :  { %2267 = vmatprep.subr.bf16.mxu0 %v4122_v24  ;;  %v4227_v24 = vld [vmem:[#allocation8 + $0x1c4] ss:$8 sps:$4 sm:$0xff]  }
 0x1e7   :  { %2268 = vmatpush1.bf16.msra.mxu0 %v4120_v26 }
 0x1e8   :  { %2269 = vmatprep.subr.bf16.mxu0 %v4128_v28  ;;  %v4225_v28 = vld [vmem:[#allocation8 + $0x1c0] ss:$8 sps:$4 sm:$0xff]  }
 0x1eb   :  { %2270 = vmatpush1.bf16.msra.mxu0 %v4126_v29  ;;  %v4230_v29 = vld [vmem:[#allocation8 + $0x1d4] ss:$8 sps:$4 sm:$0xff]  }
 0x1ec   :  { %2271 = vmatprep.subr.bf16.mxu0 %v4134_v30  ;;  %v4228_v30 = vld [vmem:[#allocation8 + $0x1d0] ss:$8 sps:$4 sm:$0xff]  }
 0x1ef   :  { %2272 = vmatpush1.bf16.msra.mxu0 %v4132_v10  ;;  %v4233_v10 = vld [vmem:[#allocation8 + $0x1e4] ss:$8 sps:$4 sm:$0xff]  }
 0x1f0   :  { %2273 = vmatprep.subr.bf16.mxu0 %v4140_v17  ;;  %v4231_v17 = vld [vmem:[#allocation8 + $0x1e0] ss:$8 sps:$4 sm:$0xff]  }
 0x1f3   :  { %2274 = vmatpush1.bf16.msra.mxu0 %v4138_v33  ;;  %v4236_v33 = vld [vmem:[#allocation8 + $0x1f4] ss:$8 sps:$4 sm:$0xff]  }
 0x1f4   :  { %2275 = vmatprep.subr.bf16.mxu0 %v4146_v34  ;;  %v4234_v34 = vld [vmem:[#allocation8 + $0x1f0] ss:$8 sps:$4 sm:$0xff]  }
 0x1f7   :  { %2276 = vmatpush1.bf16.msra.mxu0 %v4144_v21  ;;  %v4239_v21 = vld [vmem:[#allocation8 + $0x204] ss:$8 sps:$4 sm:$0xff]  }
 0x1f8   :  { %2277 = vmatprep.subr.bf16.mxu0 %v4152_v35 }
 0x1fb   :  { %2278 = vmatpush1.bf16.msra.mxu0 %v4150_v36  ;;  %v4237_v36 = vld [vmem:[#allocation8 + $0x200] ss:$8 sps:$4 sm:$0xff]  }
 0x1fc   :  { %2279 = vmatprep.subr.bf16.mxu0 %v4158_v37 }
 0x1ff   :  { %2280 = vmatpush1.bf16.msra.mxu0 %v4156_v38  ;;  %v4242_v38 = vld [vmem:[#allocation8 + $0x214] ss:$8 sps:$4 sm:$0xff]  }
 0x200   :  { %3634 = vmatprep.subr.bf16.mxu0 %v4285_v41 }
 0x202   :  { %2282 = vmatmul.mubr.bf16.vlgmr.msra.gmra.mrb[4].mxu0 %v4663_v32 }
 0x215   :  { %v2037_v61 = vpop.f32.mrb[0].mxu0 }
 0x216   :  { %v4685_v32 = vpop.f32.mrb[0].mxu1  ;;  %v3656_v46 = vadd.f32 %v2037_v61, %v454_v42  ;;  %v2039_v47 = vpop.f32.mrb[1].mxu0  ;;  %v4286_v42 = vld [vmem:[%s4754_s5] sm:$0xff]  }
 0x217   :  { %v2162_v48 = vpop.f32.mrb[1].mxu1  ;;  %v3657_v49 = vadd.f32 %v2039_v47, %v458_v43  ;;  %v2041_v51 = vpop.f32.mrb[2].mxu0  ;;  %v3658_v26 = vadd.f32 %v4685_v32, %v462_v22  ;;  %v4287_v43 = vld [vmem:[%s4754_s5 + $0x48] sm:$0xff]   ;;  %v4245_v61 = vld [vmem:[#allocation8 + $0x224] ss:$8 sps:$4 sm:$0xff]   ;;  %3635 = vmatpush3.bf16.msra.mxu0 %v4286_v42 }
 0x218   :  { %v3659_v50 = vadd.f32 %v2162_v48, %v466_v45  ;;  %v2164_v52 = vpop.f32.mrb[2].mxu1  ;;  %v2042_v53 = vpop.f32.mrb[3].mxu0  ;;  %4301 = vtanh.f32 %v3656_v46  ;;  %v4240_v45 = vld [vmem:[#allocation8 + $0x210] ss:$8 sps:$4 sm:$0xff]   ;;  %3636 = vmatprep.subr.bf16.mxu0 %v4287_v43  ;;  %v4289_v46 = vld [vmem:[%s4754_s5 + $0x50] sm:$0xff]  }
 0x219   :  { %v2165_v54 = vpop.f32.mrb[3].mxu1  ;;  %4303 = vtanh.f32 %v3657_v49  ;;  %v4288_v32 = vld [vmem:[%s4754_s5 + $0x8] sm:$0xff]   ;;  %v4243_v47 = vld [vmem:[#allocation8 + $0x220] ss:$8 sps:$4 sm:$0xff]   ;;  %v4251_v52 = vld [vmem:[#allocation8 + $0x244] ss:$8 sps:$4 sm:$0xff]  }
 0x21a   :  { %4305 = vtanh.f32 %v3659_v50  ;;  %v4248_v48 = vld [vmem:[#allocation8 + $0x234] ss:$8 sps:$4 sm:$0xff]   ;;  %v4291_v50 = vld [vmem:[%s4754_s5 + $0x58] sm:$0xff]   ;;  %v4246_v51 = vld [vmem:[#allocation8 + $0x230] ss:$8 sps:$4 sm:$0xff]  }
 0x21b   :  { %4307 = vtanh.f32 %v3658_v26  ;;  %3637 = vmatpush3.bf16.msra.mxu0 %v4288_v32  ;;  %v4290_v49 = vld [vmem:[%s4754_s5 + $0x10] sm:$0xff]   ;;  %v4292_v53 = vld [vmem:[%s4754_s5 + $0x18] sm:$0xff]   ;;  %v4293_v54 = vld [vmem:[%s4754_s5 + $0x60] sm:$0xff]  }
 0x21c   :  { %3638 = vmatprep.subr.bf16.mxu0 %v4289_v46 }
 0x21f   :  { %3639 = vmatpush3.bf16.msra.mxu0 %v4290_v49 }
 0x220   :  { %3640 = vmatprep.subr.bf16.mxu0 %v4291_v50 }
 0x222   :  { %v4302_v55 = vpop.eup %4301 }
 0x223   :  { %v4304_v56 = vpop.eup %4303  ;;  %v2296_v60 = vpack.c.bf16 %v4302_v55, %v4302_v55  ;;  %v4249_v55 = vld [vmem:[#allocation8 + $0x240] ss:$8 sps:$4 sm:$0xff]   ;;  %3641 = vmatpush3.bf16.msra.mxu0 %v4292_v53 }
 0x224   :  { %v4306_v57 = vpop.eup %4305  ;;  %v2297_v58 = vpack.c.bf16 %v4304_v56, %v4304_v56  ;;  %v4254_v56 = vld [vmem:[#allocation8 + $0x254] ss:$8 sps:$4 sm:$0xff]   ;;  %3642 = vmatprep.subr.bf16.mxu0 %v4293_v54 }
 0x225   :  { %v2299_v62 = vpack.c.bf16 %v4306_v57, %v4306_v57  ;;  %v4308_v35 = vpop.eup %4307  ;;  %v4294_v57 = vld [vmem:[%s4754_s5 + $0x20] sm:$0xff]  }
 0x226   :  { %2922 = vmatprep.mubr.bf16.mxu1 %v2297_v58  ;;  %v2298_v37 = vpack.c.bf16 %v4308_v35, %v4308_v35  ;;  %v4295_v58 = vld [vmem:[%s4754_s5 + $0x68] sm:$0xff]   ;;  %v4299_v35 = vld [vmem:[%s4754_s5 + $0x78] sm:$0xff]  }
 0x227   :  { %2923 = vmatmul.mubr.bf16.vlgmr.msra.gmra.mrb[4].mxu1 %v2296_v60  ;;  %v4257_v60 = vld [vmem:[#allocation8 + $0x264] ss:$8 sps:$4 sm:$0xff]   ;;  %3643 = vmatpush3.bf16.msra.mxu0 %v4294_v57 }
 0x228   :  { %2932 = vmatpush1.bf16.msra.mxu1 %v4189_v59  ;;  %2963 = vmatprep.mubr.bf16.mxu1 %v2299_v62  ;;  %v4252_v59 = vld [vmem:[#allocation8 + $0x250] ss:$8 sps:$4 sm:$0xff]  }
 0x229   :  { %2933 = vmatprep.subr.bf16.mxu1 %v4194_v63  ;;  %v4296_v62 = vld [vmem:[%s4754_s5 + $0x28] sm:$0xff]   ;;  %3644 = vmatprep.subr.bf16.mxu0 %v4295_v58  ;;  %v4255_v63 = vld [vmem:[#allocation8 + $0x260] ss:$8 sps:$4 sm:$0xff]  }
 0x22b   :  { %3645 = vmatpush3.bf16.msra.mxu0 %v4296_v62 }
 0x22c   :  { %2934 = vmatpush1.bf16.msra.mxu1 %v4192_v0  ;;  %v4260_v0 = vld [vmem:[#allocation8 + $0x274] ss:$8 sps:$4 sm:$0xff]  }
 0x22d   :  { %2935 = vmatprep.subr.bf16.mxu1 %v4197_v1  ;;  %v4258_v1 = vld [vmem:[#allocation8 + $0x270] ss:$8 sps:$4 sm:$0xff]  }
 0x230   :  { %2936 = vmatpush1.bf16.msra.mxu1 %v4195_v2  ;;  %v4263_v2 = vld [vmem:[#allocation8 + $0x284] ss:$8 sps:$4 sm:$0xff]  }
 0x231   :  { %2937 = vmatprep.subr.bf16.mxu1 %v4200_v3  ;;  %v4261_v3 = vld [vmem:[#allocation8 + $0x280] ss:$8 sps:$4 sm:$0xff]  }
 0x234   :  { %2938 = vmatpush1.bf16.msra.mxu1 %v4198_v4  ;;  %v4266_v4 = vld [vmem:[#allocation8 + $0x294] ss:$8 sps:$4 sm:$0xff]  }
 0x235   :  { %2939 = vmatprep.subr.bf16.mxu1 %v4203_v5  ;;  %v4264_v5 = vld [vmem:[#allocation8 + $0x290] ss:$8 sps:$4 sm:$0xff]  }
 0x238   :  { %2940 = vmatpush1.bf16.msra.mxu1 %v4201_v6  ;;  %v4269_v6 = vld [vmem:[#allocation8 + $0x2a4] ss:$8 sps:$4 sm:$0xff]  }
 0x239   :  { %2941 = vmatprep.subr.bf16.mxu1 %v4206_v7  ;;  %v4267_v7 = vld [vmem:[#allocation8 + $0x2a0] ss:$8 sps:$4 sm:$0xff]  }
 0x23c   :  { %2942 = vmatpush1.bf16.msra.mxu1 %v4204_v8  ;;  %v4272_v8 = vld [vmem:[#allocation8 + $0x2b4] ss:$8 sps:$4 sm:$0xff]  }
 0x23d   :  { %2943 = vmatprep.subr.bf16.mxu1 %v4209_v9  ;;  %v4270_v9 = vld [vmem:[#allocation8 + $0x2b0] ss:$8 sps:$4 sm:$0xff]  }
 0x240   :  { %2944 = vmatpush1.bf16.msra.mxu1 %v4207_v11  ;;  %v4275_v11 = vld [vmem:[#allocation8 + $0x2c4] ss:$8 sps:$4 sm:$0xff]  }
 0x241   :  { %2945 = vmatprep.subr.bf16.mxu1 %v4212_v12  ;;  %v4273_v12 = vld [vmem:[#allocation8 + $0x2c0] ss:$8 sps:$4 sm:$0xff]  }
 0x244   :  { %2946 = vmatpush1.bf16.msra.mxu1 %v4210_v13  ;;  %v4278_v13 = vld [vmem:[#allocation8 + $0x2d4] ss:$8 sps:$4 sm:$0xff]  }
 0x245   :  { %2947 = vmatprep.subr.bf16.mxu1 %v4215_v14  ;;  %v4276_v14 = vld [vmem:[#allocation8 + $0x2d0] ss:$8 sps:$4 sm:$0xff]  }
 0x248   :  { %2948 = vmatpush1.bf16.msra.mxu1 %v4213_v15  ;;  %v4281_v15 = vld [vmem:[#allocation8 + $0x2e4] ss:$8 sps:$4 sm:$0xff]  }
 0x249   :  { %2949 = vmatprep.subr.bf16.mxu1 %v4218_v16  ;;  %v4279_v16 = vld [vmem:[#allocation8 + $0x2e0] ss:$8 sps:$4 sm:$0xff]  }
 0x24c   :  { %2950 = vmatpush1.bf16.msra.mxu1 %v4216_v25  ;;  %v4284_v25 = vld [vmem:[#allocation8 + $0x2f4] ss:$8 sps:$4 sm:$0xff]  }
 0x24d   :  { %2951 = vmatprep.subr.bf16.mxu1 %v4221_v18  ;;  %v4282_v18 = vld [vmem:[#allocation8 + $0x2f0] ss:$8 sps:$4 sm:$0xff]  }
 0x250   :  { %2952 = vmatpush1.bf16.msra.mxu1 %v4219_v19  ;;  %v473_v19 = vsub.s32 5, %v4628_v44 }
 0x251   :  { %2953 = vmatprep.subr.bf16.mxu1 %v4224_v20  ;;  %v470_v20 = vrot.slane %v4674_v39, %v469_v31 }
 0x252   :  { %v474_v22 = vrot.slane %v4674_v39, %v473_v19  ;;  %v4298_v39 = vld [vmem:[%s4754_s5 + $0x30] sm:$0xff]  }
 0x254   :  { %2954 = vmatpush1.bf16.msra.mxu1 %v4222_v23 }
 0x255   :  { %2955 = vmatprep.subr.bf16.mxu1 %v4227_v24 }
 0x258   :  { %2956 = vmatpush1.bf16.msra.mxu1 %v4225_v28 }
 0x259   :  { %2957 = vmatprep.subr.bf16.mxu1 %v4230_v29 }
 0x25c   :  { %2958 = vmatpush1.bf16.msra.mxu1 %v4228_v30 }
 0x25d   :  { %2959 = vmatprep.subr.bf16.mxu1 %v4233_v10 }
 0x260   :  { %2960 = vmatpush1.bf16.msra.mxu1 %v4231_v17 }
 0x261   :  { %2961 = vmatprep.subr.bf16.mxu1 %v4236_v33 }
 0x264   :  { %2962 = vmatpush1.bf16.msra.mxu1 %v4234_v34 }
 0x265   :  { %2972 = vmatprep.subr.bf16.mxu1 %v4239_v21  ;;  %v4297_v21 = vld [vmem:[%s4754_s5 + $0x70] sm:$0xff]  }
 0x266   :  { %3646 = vmatprep.subr.bf16.mxu0 %v4297_v21 }
 0x267   :  { %2964 = vmatmul.mubr.bf16.vlgmr.msra.gmra.mrb[4].mxu1 %v2298_v37  ;;  %3647 = vmatpush3.bf16.msra.mxu0 %v4298_v39  ;;  %v2398_v37 = vld [vmem:[#allocation10] sm:$0x3] }
 0x268   :  { %2973 = vmatpush1.bf16.msra.mxu1 %v4237_v36  ;;  %v4300_v36 = vld [vmem:[%s4754_s5 + $0x38] sm:$0xff]   ;;  %3648 = vmatprep.subr.bf16.mxu0 %v4299_v35  ;;  %v2407_v41 = vrot.slane %v2398_v37, %v457_v40  ;;  %v3631_v40 = vld [vmem:[#allocation13] ss:$0 sm:$0xff] }
 0x269   :  { %2974 = vmatprep.subr.bf16.mxu1 %v4242_v38  ;;  %v2403_v38 = vrot.slane %v2398_v37, %v453_v27 }
 0x26b   :  { %3649 = vmatpush3.bf16.msra.mxu0 %v4300_v36 }
 0x26c   :  { %2975 = vmatpush1.bf16.msra.mxu1 %v4240_v45 }
 0x26d   :  { %2976 = vmatprep.subr.bf16.mxu1 %v4245_v61 }
 0x270   :  { %2977 = vmatpush1.bf16.msra.mxu1 %v4243_v47 }
 0x271   :  { %2978 = vmatprep.subr.bf16.mxu1 %v4248_v48 }
 0x274   :  { %2979 = vmatpush1.bf16.msra.mxu1 %v4246_v51 }
 0x275   :  { %2980 = vmatprep.subr.bf16.mxu1 %v4251_v52  ;;  %v3614_v52 = vld [vmem:[#allocation11] ss:$0 sm:$0xff] }
 0x278   :  { %2981 = vmatpush1.bf16.msra.mxu1 %v4249_v55 }
 0x279   :  { %2982 = vmatprep.subr.bf16.mxu1 %v4254_v56 }
 0x27c   :  { %2983 = vmatpush1.bf16.msra.mxu1 %v4252_v59  ;;  %v3632_v59 = vld [vmem:[#allocation2] ss:$0 sm:$0xff] }
 0x27d   :  { %2984 = vmatprep.subr.bf16.mxu1 %v4257_v60 }
 0x280   :  { %2985 = vmatpush1.bf16.msra.mxu1 %v4255_v63 }
 0x281   :  { %2986 = vmatprep.subr.bf16.mxu1 %v4260_v0 }
 0x284   :  { %2987 = vmatpush1.bf16.msra.mxu1 %v4258_v1 }
 0x285   :  { %2988 = vmatprep.subr.bf16.mxu1 %v4263_v2 }
 0x288   :  { %2989 = vmatpush1.bf16.msra.mxu1 %v4261_v3 }
 0x289   :  { %2990 = vmatprep.subr.bf16.mxu1 %v4266_v4 }
 0x28c   :  { %2991 = vmatpush1.bf16.msra.mxu1 %v4264_v5 }
 0x28d   :  { %2992 = vmatprep.subr.bf16.mxu1 %v4269_v6 }
 0x290   :  { %2993 = vmatpush1.bf16.msra.mxu1 %v4267_v7 }
 0x291   :  { %2994 = vmatprep.subr.bf16.mxu1 %v4272_v8 }
 0x294   :  { %2995 = vmatpush1.bf16.msra.mxu1 %v4270_v9 }
 0x295   :  { %2996 = vmatprep.subr.bf16.mxu1 %v4275_v11 }
 0x298   :  { %2997 = vmatpush1.bf16.msra.mxu1 %v4273_v12 }
 0x299   :  { %2998 = vmatprep.subr.bf16.mxu1 %v4278_v13 }
 0x29c   :  { %2999 = vmatpush1.bf16.msra.mxu1 %v4276_v14 }
 0x29d   :  { %3000 = vmatprep.subr.bf16.mxu1 %v4281_v15 }
 0x2a0   :  { %3001 = vmatpush1.bf16.msra.mxu1 %v4279_v16 }
 0x2a1   :  { %3002 = vmatprep.subr.bf16.mxu1 %v4284_v25 }
 0x2a4   :  { %3003 = vmatpush1.bf16.msra.mxu1 %v4282_v18 }
 0x2d5   :  { %v2283_v23 = vpop.f32.mrb[4].mxu0 }
 0x2d6   :  { %v3660_v24 = vadd.f32 %v2283_v23, %v470_v20  ;;  %v2285_v26 = vpop.f32.mrb[5].mxu0 }
 0x2d7   :  { %v3661_v28 = vadd.f32 %v2285_v26, %v474_v22  ;;  %v2287_v29 = vpop.f32.mrb[6].mxu0 }
 0x2d8   :  { %4309 = vtanh.f32 %v3660_v24  ;;  %v2288_v30 = vpop.f32.mrb[7].mxu0 }
 0x2d9   :  { %4311 = vtanh.f32 %v3661_v28 }
 0x2e2   :  { %v4310_v10 = vpop.eup %4309 }
 0x2e3   :  { %v4312_v17 = vpop.eup %4311  ;;  %v2300_v34 = vpack.c.bf16 %v4310_v10, %v4310_v10 }
 0x2e4   :  { %v2301_v33 = vpack.c.bf16 %v4312_v17, %v4312_v17 }
 0x2e6   :  { %3004 = vmatprep.mubr.bf16.mxu1 %v2301_v33 }
 0x2e7   :  { %3005 = vmatmul.mubr.bf16.vlgmr.msra.gmra.mrb[4].mxu1 %v2300_v34 }
 0x3ba   :  { %v3006_v42 = vpop.f32.mrb[4].mxu1 }
 0x3bb   :  { %v3662_v43 = vadd.f32 %v3006_v42, %v2403_v38  ;;  %v3008_v45 = vpop.f32.mrb[5].mxu1 }
 0x3bc   :  { %v3663_v61 = vadd.f32 %v3008_v45, %v2407_v41  ;;  %v3010_v32 = vpop.f32.mrb[6].mxu1 }
 0x3bd   :  { %v3013_v46 = vmax.f32 %v3662_v43, 0.0  ;;  %v3011_v47 = vpop.f32.mrb[7].mxu1 }
 0x3be   :  { %v3014_v48 = vmax.f32 %v3663_v61, 0.0 }
 0x3bf   :  { %v3015_v50 = vpack.c.bf16 %v3013_v46, %v3013_v46 }
 0x3c0   :  { %v3016_v49 = vpack.c.bf16 %v3014_v48, %v3014_v48 }
 0x3c2   :  { %3184 = vmatprep.mubr.bf16.mxu0 %v3016_v49 }
 0x3c3   :  { %3185 = vmatmul.mubr.bf16.vlgmr.msra.gmra.mrb[8].mxu0 %v3015_v50 }
 0x496   :  { %v3650_v51 = vpop.f32.mrb[8].mxu0 }
 0x497   :  { %v3651_v53 = vpop.f32.mrb[9].mxu0 }
 0x498   :  { %v3652_v54 = vadd.f32 %v3651_v53, %v3650_v51  ;;  %v3653_v27 = vpop.f32.mrb[10].mxu0 }
 0x499   :  { %v3654_v55 = vpop.f32.mrb[11].mxu0 }
 0x49a   :  { %v3187_v44 = vadd.f32 %v3652_v54, %v3614_v52 }
 0x49c   :  { %v3192_v56 = vmax.f32 %v3187_v44, 0.0 }
 0x49e   :  { %v3200_v57 = vmul.f32 %v3631_v40, %v3192_v56 }
 0x4a0   :  { %v3202_v58 = vsel %vm3201_vm0, %v3200_v57, 0.0 }
 0x4a1   :  { %3203 = vadd.xlane.f32.xlu0 %v3202_v58 }
 0x52e   :  { %v3204_v60 = vpop.xlane.xlu0 %3203 }
 0x52f   :  { %v3212_v62 = vadd.f32 %v3632_v59, %v3204_v60 }
 0x531   :  { %v3633_v63 = vmul.f32 -1.442695, %v3212_v62 }
 0x533   :  { %4313 = vpow2.f32 %v3633_v63 }
 0x53d   :  { %v4314_v0 = vpop.eup %4313 }
 0x53e   :  { %v3216_v1 = vadd.f32 1.0, %v4314_v0 }
 0x540   :  { %4315 = vrcp.f32 %v3216_v1 }
 0x54a   :  { %v4316_v2 = vpop.eup %4315 }
 0x54b   :  { %3220 = vst.msk [vmem:[%s4758_s9] sm:$0x3] %vm3219_vm1, %v4316_v2 }
 0x54c   :  { %3225 = vsyncpa [#allocation4], 1 }
 0x54d   :  { %3226 = vsyncpa [#allocation6], 1 }
 0x54e   :  { %3227 = vsyncpa [#allocation9], 1 }
 0x54f   :  { %3228 = vsyncpa [#allocation12], 1 }

</bundles_post_ra>
